<compile_context>
chip_gen: v5e
topology: v5e:2x2
jax: 0.10.0
libtpu: 0.0.40
codegen_flags: <defaults>
</compile_context>

<pallas_src>
import functools

import jax
import jax.numpy as jnp
from jax import lax
from jax.experimental import pallas as pl
from jax.experimental.pallas import tpu as pltpu


def _inverted_residual_kernel(*refs, H, W, stride, row_block, expand, use_res):
    """One (image, output-row-block) tile per grid step.

    refs (expand=True):
      x_ref   : (1, H+2, W, Cin)  f32  input, H zero-padded by 1 top/bottom
      w1_ref  : (Cin, hid)        bf16 1x1 expand conv weight
      s1/b1   : (1, hid)          f32  folded BN1 scale / bias
      wdw_ref : (3, 3, hid)       f32  depthwise 3x3 weight
      s2/b2   : (1, hid)          f32  folded BN2 scale / bias
      w3_ref  : (hid, oup)        bf16 1x1 project weight (unpadded)
      s3/b3   : (1, oup)          f32  folded BN3 scale / bias
      o_ref   : (1, Rb, Wo, oup)
    refs (expand=False): same without w1/s1/b1.
    """
    if expand:
        (x_ref, w1_ref, s1_ref, b1_ref,
         wdw_ref, s2_ref, b2_ref,
         w3_ref, s3_ref, b3_ref, o_ref) = refs
    else:
        (x_ref, wdw_ref, s2_ref, b2_ref,
         w3_ref, s3_ref, b3_ref, o_ref) = refs

    cin = x_ref.shape[-1]
    hid = wdw_ref.shape[-1]
    oup = w3_ref.shape[-1]
    Rb = row_block
    Wo = (W - 1) // stride + 1
    Hin = (Rb - 1) * stride + 3            # input rows needed (incl. 1-row halo)

    r = pl.program_id(1)
    row0 = pl.multiple_of(r * Rb * stride, Rb * stride)   # start row (padded coords)

    # ---- input row window: dynamic slice along the untiled leading dim -----
    xw = x_ref[0, pl.ds(row0, Hin), :, :].astype(jnp.float32)   # (Hin, W, cin)

    # ---- 1x1 expand conv + BN + ReLU6 (bf16 MXU operands, f32 accumulate) --
    if expand:
        h = jnp.dot(xw.reshape(Hin * W, cin).astype(jnp.bfloat16), w1_ref[...],
                    preferred_element_type=jnp.float32)          # (Hin*W, hid)
        h = jnp.clip(h * s1_ref[...] + b1_ref[...], 0.0, 6.0)    # ReLU6
        h = h.reshape(Hin, W, hid)
        # The H-halo pad rows are zero in x, but BN bias makes them non-zero
        # after the expand conv: force them back to the true zero padding.
        gidx = row0 + lax.broadcasted_iota(jnp.int32, (Hin, 1, 1), 0)
        h = jnp.where((gidx == 0) | (gidx == H + 1), 0.0, h)
    else:
        h = xw                              # hid == cin; pad rows already zero

    # ---- 3x3 depthwise conv (pad=1, stride s) + BN + ReLU6 (VPU + XLU) -----
    Wc = W if stride == 1 else W // 2
    col = lax.broadcasted_iota(jnp.int32, (1, Wc, 1), 1)
    if stride == 1:
        # column taps built once via sublane rolls; wrap column is the padded
        # zero, enforced with a single-column mask.
        left = jnp.where(col == 0, 0.0, pltpu.roll(h, 1, axis=1))          # x-1
        right = jnp.where(col == W - 1, 0.0, pltpu.roll(h, W - 1, axis=1)) # x+1
        taps = (left, h, right)                                  # kw = 0, 1, 2

        def rows(t, kh):                     # output row y reads window row y+kh
            return lax.slice(t, (kh, 0, 0), (kh + Rb, Wo, hid))
    else:
        # deinterleave even/odd columns ONCE, then one roll for the kw=0 tap.
        h4 = h.reshape(Hin, W // 2, 2, hid)
        even, odd = h4[:, :, 0, :], h4[:, :, 1, :]               # cols 2x / 2x+1
        left = jnp.where(col == 0, 0.0, pltpu.roll(odd, 1, axis=1))        # 2x-1
        taps = (left, even, odd)                                 # kw = 0, 1, 2

        def rows(t, kh):                     # output row y reads window row 2y+kh
            return lax.slice(t, (kh, 0, 0), (kh + 2 * Rb - 1, Wo, hid), (2, 1, 1))

    w_dw = wdw_ref[...]                                          # (3, 3, hid)
    acc = jnp.zeros((Rb, Wo, hid), jnp.float32)
    for kh in range(3):                                          # static 9-tap unroll
        for kw in range(3):
            acc = acc + rows(taps[kw], kh) * w_dw[kh, kw]
    acc = jnp.clip(acc * s2_ref[...] + b2_ref[...], 0.0, 6.0)    # BN2 + ReLU6

    # ---- 1x1 project conv + BN (unpadded oup output) ------------------------
    out = jnp.dot(acc.reshape(Rb * Wo, hid).astype(jnp.bfloat16), w3_ref[...],
                  preferred_element_type=jnp.float32)            # (Rb*Wo, oup)
    out = (out * s3_ref[...] + b3_ref[...]).reshape(Rb, Wo, oup)

    # ---- residual (exact f32 add of the already-loaded input rows) ---------
    if use_res:                              # stride == 1 and cin == oup
        out = out + xw[1:Rb + 1]             # window rows 1..Rb == real rows

    o_ref[...] = out.reshape(1, Rb, Wo, oup).astype(o_ref.dtype)


def inverted_residual_nhwc(x, params, *, stride, expand_ratio, row_block=None):
    """x: (N, H, W, Cin) float32.  Returns (N, Ho, Wo, oup)."""
    assert stride in (1, 2)
    N, H, W, cin = x.shape
    expand = expand_ratio != 1
    hid = params["wdw"].shape[-1]
    oup = params["w3"].shape[1]
    use_res = (stride == 1) and (cin == oup)
    Ho = (H - 1) // stride + 1
    Wo = (W - 1) // stride + 1
    if stride == 2:
        # TODO(synk): odd W at stride 2 needs one extra masked column.
        assert W % 2 == 0

    if row_block is None:
        # largest divisor of Ho that is <= 8: >= 2 row blocks at demo shapes,
        # and keeps the per-step activation window small on v7x (64 MiB VMEM).
        row_block = max(d for d in range(1, min(Ho, 8) + 1) if Ho % d == 0)
    Rb = row_block
    assert Ho % Rb == 0

    # One zero row above/below so every row-block window is a single in-range
    # dynamic slice.  W padding is handled in-kernel via rolls (no pad buffer),
    # which also keeps the residual path reading the unpadded x directly.
    x_pre = jnp.pad(x, ((0, 0), (1, 1), (0, 0), (0, 0)))

    kernel = functools.partial(
        _inverted_residual_kernel,
        H=H, W=W, stride=stride, row_block=Rb, expand=expand, use_res=use_res)

    def whole(shape):
        # replicated (weight) operand: full-array block, constant index -> resident
        return pl.BlockSpec(shape, lambda n, r: (0,) * len(shape))

    args = [x_pre]
    # x block index depends only on n -> stays resident in VMEM across the
    # row-block axis (re-DMA'd only when the image changes).
    in_specs = [pl.BlockSpec((1, H + 2, W, cin), lambda n, r: (n, 0, 0, 0))]
    if expand:
        args += [params["w1"].astype(jnp.bfloat16), params["s1"], params["b1"]]
        in_specs += [whole((cin, hid)), whole((1, hid)), whole((1, hid))]
    args += [params["wdw"], params["s2"], params["b2"],
             params["w3"].astype(jnp.bfloat16), params["s3"], params["b3"]]
    in_specs += [whole((3, 3, hid)), whole((1, hid)), whole((1, hid)),
                 whole((hid, oup)), whole((1, oup)), whole((1, oup))]

    return pl.pallas_call(
        kernel,
        out_shape=jax.ShapeDtypeStruct((N, Ho, Wo, oup), x.dtype),
        grid=(N, Ho // Rb),
        in_specs=in_specs,
        out_specs=pl.BlockSpec((1, Rb, Wo, oup), lambda n, r: (n, r, 0, 0)),
        compiler_params=pltpu.CompilerParams(
            dimension_semantics=("parallel", "parallel"),
            # small per-step blocks: 32 MiB is safe on v5e/v6e/v7x alike.
            # (Raise toward 64-100 MiB on v5e/v6e only if blocks are enlarged.)
            vmem_limit_bytes=32 * 1024 * 1024),
    )(*args)


# ----------------------------- glue / setup ---------------------------------

def _fold_bn(gamma, beta, mean, var, eps=1e-5):
    scale = gamma / jnp.sqrt(var + eps)
    bias = beta - mean * scale
    return scale[None, :], bias[None, :]          # (1, C)


def make_params(key, inp, oup, expand_ratio):
    """Deterministic synthetic parameters mirroring the PyTorch module shapes.

    PyTorch stores 1x1 conv weights as (out, in, 1, 1) and depthwise as
    (hid, 1, 3, 3); here they are kept pre-transposed as (in, out) and
    (3, 3, hid) for the NHWC kernel.
    """
    hidden = round(inp * expand_ratio)
    ks = jax.random.split(key, 16)
    p = {}
    if expand_ratio != 1:
        p["w1"] = 0.2 * jax.random.normal(ks[0], (inp, hidden), jnp.float32)
        p["s1"], p["b1"] = _fold_bn(
            jax.random.uniform(ks[1], (hidden,), minval=0.5, maxval=1.5),
            0.1 * jax.random.normal(ks[2], (hidden,)),
            0.1 * jax.random.normal(ks[3], (hidden,)),
            jax.random.uniform(ks[4], (hidden,), minval=0.5, maxval=1.5))
    p["wdw"] = 0.2 * jax.random.normal(ks[5], (3, 3, hidden), jnp.float32)
    p["s2"], p["b2"] = _fold_bn(
        jax.random.uniform(ks[6], (hidden,), minval=0.5, maxval=1.5),
        0.1 * jax.random.normal(ks[7], (hidden,)),
        0.1 * jax.random.normal(ks[8], (hidden,)),
        jax.random.uniform(ks[9], (hidden,), minval=0.5, maxval=1.5))
    p["w3"] = 0.2 * jax.random.normal(ks[10], (hidden, oup), jnp.float32)
    p["s3"], p["b3"] = _fold_bn(
        jax.random.uniform(ks[11], (oup,), minval=0.5, maxval=1.5),
        0.1 * jax.random.normal(ks[12], (oup,)),
        0.1 * jax.random.normal(ks[13], (oup,)),
        jax.random.uniform(ks[14], (oup,), minval=0.5, maxval=1.5))
    return p


def reference_nhwc(x, p, *, stride, expand_ratio):
    """Pure-JAX reference with the kernel's numerics: bf16 MXU inputs +
    f32 accumulation for the 1x1 convs, f32 depthwise (same 9-tap order),
    eval-mode folded BN.  Semantically identical to the PyTorch forward."""
    f32, bf16 = jnp.float32, jnp.bfloat16
    h = x.astype(f32)
    if expand_ratio != 1:
        h = jnp.einsum("nhwc,cd->nhwd", x.astype(bf16), p["w1"].astype(bf16),
                       preferred_element_type=f32)
        h = jnp.clip(h * p["s1"] + p["b1"], 0.0, 6.0)
    N, H, W, hid = h.shape
    Ho = (H - 1) // stride + 1
    Wo = (W - 1) // stride + 1
    hp = jnp.pad(h, ((0, 0), (1, 1), (1, 1), (0, 0)))
    acc = jnp.zeros((N, Ho, Wo, hid), f32)
    for kh in range(3):                       # depthwise 3x3, groups == hid
        for kw in range(3):
            patch = hp[:, kh:kh + stride * (Ho - 1) + 1:stride,
                       kw:kw + stride * (Wo - 1) + 1:stride, :]
            acc = acc + patch * p["wdw"][kh, kw]
    acc = jnp.clip(acc * p["s2"] + p["b2"], 0.0, 6.0)
    out = jnp.einsum("nhwc,cd->nhwd", acc.astype(bf16), p["w3"].astype(bf16),
                     preferred_element_type=f32)
    out = out * p["s3"] + p["b3"]
    if stride == 1 and x.shape[-1] == out.shape[-1]:
        out = out + x
    return out


if __name__ == "__main__":
    # InvertedResidual(inp=4, oup=4, stride=1, expand_ratio=6)
    #  -> hidden_dim = 24, residual connection active.
    N, C, H, W = 2, 4, 16, 16
    stride, expand_ratio, oup = 1, 6, 4

    key = jax.random.PRNGKey(0)
    kx, kp = jax.random.split(key)
    x_nchw = jax.random.normal(kx, (N, C, H, W), jnp.float32)  # PyTorch layout
    x = jnp.transpose(x_nchw, (0, 2, 3, 1))                    # -> NHWC

    params = make_params(kp, C, oup, expand_ratio)

    out = inverted_residual_nhwc(x, params, stride=stride,
                                 expand_ratio=expand_ratio)
    out = jax.block_until_ready(out)

    ref = reference_nhwc(x, params, stride=stride, expand_ratio=expand_ratio)
    assert out.shape == ref.shape, (out.shape, ref.shape)
    # bf16 matmul inputs (native single-pass MXU) -> allow a few bf16 ulps of
    # slack between the MXU and the XLA reference.
    max_err = float(jnp.max(jnp.abs(out - ref)))
    assert jnp.allclose(out, ref, atol=5e-2, rtol=5e-2), max_err

    print("KERNEL_OK")
</pallas_src>

<mosaic_0001>
module attributes {stable_mosaic.version = 11 : i64} {
  func.func @_inverted_residual_kernel(%arg0: i32, %arg1: i32, %arg2: memref<1x18x16x4xf32, #tpu.memory_space<vmem>>, %arg3: memref<4x24xbf16, #tpu.memory_space<vmem>>, %arg4: memref<1x24xf32, #tpu.memory_space<vmem>>, %arg5: memref<1x24xf32, #tpu.memory_space<vmem>>, %arg6: memref<3x3x24xf32, #tpu.memory_space<vmem>>, %arg7: memref<1x24xf32, #tpu.memory_space<vmem>>, %arg8: memref<1x24xf32, #tpu.memory_space<vmem>>, %arg9: memref<24x4xbf16, #tpu.memory_space<vmem>>, %arg10: memref<1x4xf32, #tpu.memory_space<vmem>>, %arg11: memref<1x4xf32, #tpu.memory_space<vmem>>, %arg12: memref<1x8x16x4xf32, #tpu.memory_space<vmem>>) attributes {dimension_semantics = [#tpu.dimension_semantics<parallel>, #tpu.dimension_semantics<parallel>], iteration_bounds = array<i64: 2, 2>, scalar_prefetch = 0 : i64, scratch_operands = 0 : i64, tpu.core_type = #tpu.core_type<tc>, window_params = [{transform_indices = @transform_0, window_bounds = array<i64: 1, 18, 16, 4>}, {pipeline_mode = #tpu.pipeline_mode<synchronous>, transform_indices = @transform_1, window_bounds = array<i64: 4, 24>}, {pipeline_mode = #tpu.pipeline_mode<synchronous>, transform_indices = @transform_2, window_bounds = array<i64: 1, 24>}, {pipeline_mode = #tpu.pipeline_mode<synchronous>, transform_indices = @transform_3, window_bounds = array<i64: 1, 24>}, {pipeline_mode = #tpu.pipeline_mode<synchronous>, transform_indices = @transform_4, window_bounds = array<i64: 3, 3, 24>}, {pipeline_mode = #tpu.pipeline_mode<synchronous>, transform_indices = @transform_5, window_bounds = array<i64: 1, 24>}, {pipeline_mode = #tpu.pipeline_mode<synchronous>, transform_indices = @transform_6, window_bounds = array<i64: 1, 24>}, {pipeline_mode = #tpu.pipeline_mode<synchronous>, transform_indices = @transform_7, window_bounds = array<i64: 24, 4>}, {pipeline_mode = #tpu.pipeline_mode<synchronous>, transform_indices = @transform_8, window_bounds = array<i64: 1, 4>}, {pipeline_mode = #tpu.pipeline_mode<synchronous>, transform_indices = @transform_9, window_bounds = array<i64: 1, 4>}, {transform_indices = @transform_10, window_bounds = array<i64: 1, 8, 16, 4>}]} {
    %c8_i32 = arith.constant 8 : i32
    %0 = arith.muli %arg1, %c8_i32 : i32
    %c1_i32 = arith.constant 1 : i32
    %1 = arith.muli %0, %c1_i32 : i32
    %2 = tpu.assume_multiple %1, 8 : i32
    %c0 = arith.constant 0 : index
    %3 = arith.index_cast %2 : i32 to index
    %c0_0 = arith.constant 0 : index
    %c0_1 = arith.constant 0 : index
    %4 = vector.load %arg2[%c0, %3, %c0_0, %c0_1] : memref<1x18x16x4xf32, #tpu.memory_space<vmem>>, vector<1x10x16x4xf32>
    %5 = vector.shape_cast %4 : vector<1x10x16x4xf32> to vector<10x16x4xf32>
    %6 = vector.shape_cast %5 : vector<10x16x4xf32> to vector<160x4xf32>
    %7 = arith.truncf %6 : vector<160x4xf32> to vector<160x4xbf16>
    %c0_2 = arith.constant 0 : index
    %c0_3 = arith.constant 0 : index
    %8 = vector.load %arg3[%c0_2, %c0_3] : memref<4x24xbf16, #tpu.memory_space<vmem>>, vector<4x24xbf16>
    %cst = arith.constant dense<0.000000e+00> : vector<160x24xf32>
    %9 = tpu.matmul %7, %8, %cst {dimension_numbers = #tpu.dot_dimension_numbers<[1], [0], [0], [1], [0, 0, 1, 1], [], []>} : vector<160x4xbf16>, vector<4x24xbf16>, vector<160x24xf32> -> vector<160x24xf32>
    %c0_4 = arith.constant 0 : index
    %c0_5 = arith.constant 0 : index
    %10 = vector.load %arg4[%c0_4, %c0_5] : memref<1x24xf32, #tpu.memory_space<vmem>>, vector<1x24xf32>
    %11 = vector.broadcast %10 : vector<1x24xf32> to vector<160x24xf32>
    %12 = arith.mulf %9, %11 : vector<160x24xf32>
    %c0_6 = arith.constant 0 : index
    %c0_7 = arith.constant 0 : index
    %13 = vector.load %arg5[%c0_6, %c0_7] : memref<1x24xf32, #tpu.memory_space<vmem>>, vector<1x24xf32>
    %14 = vector.broadcast %13 : vector<1x24xf32> to vector<160x24xf32>
    %15 = arith.addf %12, %14 : vector<160x24xf32>
    %cst_8 = arith.constant 0.000000e+00 : f32
    %cst_9 = arith.constant 6.000000e+00 : f32
    %16 = vector.broadcast %cst_8 : f32 to vector<160x24xf32>
    %17 = arith.maximumf %16, %15 : vector<160x24xf32>
    %18 = vector.broadcast %cst_9 : f32 to vector<160x24xf32>
    %19 = arith.minimumf %18, %17 : vector<160x24xf32>
    %20 = vector.shape_cast %19 : vector<160x24xf32> to vector<10x16x24xf32>
    %21 = tpu.iota {dimensions = array<i32: 0>} : vector<10x1x1xi32>
    %22 = vector.broadcast %2 : i32 to vector<10x1x1xi32>
    %23 = arith.addi %22, %21 : vector<10x1x1xi32>
    %c0_i32 = arith.constant 0 : i32
    %24 = vector.broadcast %c0_i32 : i32 to vector<10x1x1xi32>
    %25 = arith.cmpi eq, %23, %24 : vector<10x1x1xi32>
    %c17_i32 = arith.constant 17 : i32
    %26 = vector.broadcast %c17_i32 : i32 to vector<10x1x1xi32>
    %27 = arith.cmpi eq, %23, %26 : vector<10x1x1xi32>
    %28 = arith.ori %25, %27 : vector<10x1x1xi1>
    %cst_10 = arith.constant 0.000000e+00 : f32
    %29 = vector.shape_cast %28 : vector<10x1x1xi1> to vector<10x1x1xi1>
    %30 = vector.broadcast %29 : vector<10x1x1xi1> to vector<10x16x24xi1>
    %31 = vector.broadcast %cst_10 : f32 to vector<10x16x24xf32>
    %32 = arith.select %30, %31, %20 : vector<10x16x24xi1>, vector<10x16x24xf32>
    %33 = tpu.iota {dimensions = array<i32: 1>} : vector<1x16x1xi32>
    %c0_i32_11 = arith.constant 0 : i32
    %34 = vector.broadcast %c0_i32_11 : i32 to vector<1x16x1xi32>
    %35 = arith.cmpi eq, %33, %34 : vector<1x16x1xi32>
    %c1_i32_12 = arith.constant 1 : i32
    %36 = tpu.dynamic_rotate %32 by %c1_i32_12 dim 1 : vector<10x16x24xf32>, i32 -> vector<10x16x24xf32>
    %cst_13 = arith.constant 0.000000e+00 : f32
    %37 = vector.shape_cast %35 : vector<1x16x1xi1> to vector<1x16x1xi1>
    %38 = vector.broadcast %37 : vector<1x16x1xi1> to vector<10x16x24xi1>
    %39 = vector.broadcast %cst_13 : f32 to vector<10x16x24xf32>
    %40 = arith.select %38, %39, %36 : vector<10x16x24xi1>, vector<10x16x24xf32>
    %c15_i32 = arith.constant 15 : i32
    %41 = vector.broadcast %c15_i32 : i32 to vector<1x16x1xi32>
    %42 = arith.cmpi eq, %33, %41 : vector<1x16x1xi32>
    %c15_i32_14 = arith.constant 15 : i32
    %43 = tpu.dynamic_rotate %32 by %c15_i32_14 dim 1 : vector<10x16x24xf32>, i32 -> vector<10x16x24xf32>
    %cst_15 = arith.constant 0.000000e+00 : f32
    %44 = vector.shape_cast %42 : vector<1x16x1xi1> to vector<1x16x1xi1>
    %45 = vector.broadcast %44 : vector<1x16x1xi1> to vector<10x16x24xi1>
    %46 = vector.broadcast %cst_15 : f32 to vector<10x16x24xf32>
    %47 = arith.select %45, %46, %43 : vector<10x16x24xi1>, vector<10x16x24xf32>
    %c0_16 = arith.constant 0 : index
    %c0_17 = arith.constant 0 : index
    %c0_18 = arith.constant 0 : index
    %48 = vector.load %arg6[%c0_16, %c0_17, %c0_18] : memref<3x3x24xf32, #tpu.memory_space<vmem>>, vector<3x3x24xf32>
    %cst_19 = arith.constant 0.000000e+00 : f32
    %49 = vector.broadcast %cst_19 : f32 to vector<8x16x24xf32>
    %50 = vector.extract_strided_slice %40 {offsets = [0, 0, 0], sizes = [8, 16, 24], strides = [1, 1, 1]} : vector<10x16x24xf32> to vector<8x16x24xf32>
    %51 = vector.extract_strided_slice %48 {offsets = [0, 0, 0], sizes = [1, 1, 24], strides = [1, 1, 1]} : vector<3x3x24xf32> to vector<1x1x24xf32>
    %52 = vector.shape_cast %51 : vector<1x1x24xf32> to vector<24xf32>
    %53 = vector.shape_cast %52 : vector<24xf32> to vector<1x1x24xf32>
    %54 = vector.broadcast %53 : vector<1x1x24xf32> to vector<8x16x24xf32>
    %55 = arith.mulf %50, %54 : vector<8x16x24xf32>
    %56 = arith.addf %49, %55 : vector<8x16x24xf32>
    %57 = vector.extract_strided_slice %32 {offsets = [0, 0, 0], sizes = [8, 16, 24], strides = [1, 1, 1]} : vector<10x16x24xf32> to vector<8x16x24xf32>
    %58 = vector.extract_strided_slice %48 {offsets = [0, 1, 0], sizes = [1, 1, 24], strides = [1, 1, 1]} : vector<3x3x24xf32> to vector<1x1x24xf32>
    %59 = vector.shape_cast %58 : vector<1x1x24xf32> to vector<24xf32>
    %60 = vector.shape_cast %59 : vector<24xf32> to vector<1x1x24xf32>
    %61 = vector.broadcast %60 : vector<1x1x24xf32> to vector<8x16x24xf32>
    %62 = arith.mulf %57, %61 : vector<8x16x24xf32>
    %63 = arith.addf %56, %62 : vector<8x16x24xf32>
    %64 = vector.extract_strided_slice %47 {offsets = [0, 0, 0], sizes = [8, 16, 24], strides = [1, 1, 1]} : vector<10x16x24xf32> to vector<8x16x24xf32>
    %65 = vector.extract_strided_slice %48 {offsets = [0, 2, 0], sizes = [1, 1, 24], strides = [1, 1, 1]} : vector<3x3x24xf32> to vector<1x1x24xf32>
    %66 = vector.shape_cast %65 : vector<1x1x24xf32> to vector<24xf32>
    %67 = vector.shape_cast %66 : vector<24xf32> to vector<1x1x24xf32>
    %68 = vector.broadcast %67 : vector<1x1x24xf32> to vector<8x16x24xf32>
    %69 = arith.mulf %64, %68 : vector<8x16x24xf32>
    %70 = arith.addf %63, %69 : vector<8x16x24xf32>
    %71 = vector.extract_strided_slice %40 {offsets = [1, 0, 0], sizes = [8, 16, 24], strides = [1, 1, 1]} : vector<10x16x24xf32> to vector<8x16x24xf32>
    %72 = vector.extract_strided_slice %48 {offsets = [1, 0, 0], sizes = [1, 1, 24], strides = [1, 1, 1]} : vector<3x3x24xf32> to vector<1x1x24xf32>
    %73 = vector.shape_cast %72 : vector<1x1x24xf32> to vector<24xf32>
    %74 = vector.shape_cast %73 : vector<24xf32> to vector<1x1x24xf32>
    %75 = vector.broadcast %74 : vector<1x1x24xf32> to vector<8x16x24xf32>
    %76 = arith.mulf %71, %75 : vector<8x16x24xf32>
    %77 = arith.addf %70, %76 : vector<8x16x24xf32>
    %78 = vector.extract_strided_slice %32 {offsets = [1, 0, 0], sizes = [8, 16, 24], strides = [1, 1, 1]} : vector<10x16x24xf32> to vector<8x16x24xf32>
    %79 = vector.extract_strided_slice %48 {offsets = [1, 1, 0], sizes = [1, 1, 24], strides = [1, 1, 1]} : vector<3x3x24xf32> to vector<1x1x24xf32>
    %80 = vector.shape_cast %79 : vector<1x1x24xf32> to vector<24xf32>
    %81 = vector.shape_cast %80 : vector<24xf32> to vector<1x1x24xf32>
    %82 = vector.broadcast %81 : vector<1x1x24xf32> to vector<8x16x24xf32>
    %83 = arith.mulf %78, %82 : vector<8x16x24xf32>
    %84 = arith.addf %77, %83 : vector<8x16x24xf32>
    %85 = vector.extract_strided_slice %47 {offsets = [1, 0, 0], sizes = [8, 16, 24], strides = [1, 1, 1]} : vector<10x16x24xf32> to vector<8x16x24xf32>
    %86 = vector.extract_strided_slice %48 {offsets = [1, 2, 0], sizes = [1, 1, 24], strides = [1, 1, 1]} : vector<3x3x24xf32> to vector<1x1x24xf32>
    %87 = vector.shape_cast %86 : vector<1x1x24xf32> to vector<24xf32>
    %88 = vector.shape_cast %87 : vector<24xf32> to vector<1x1x24xf32>
    %89 = vector.broadcast %88 : vector<1x1x24xf32> to vector<8x16x24xf32>
    %90 = arith.mulf %85, %89 : vector<8x16x24xf32>
    %91 = arith.addf %84, %90 : vector<8x16x24xf32>
    %92 = vector.extract_strided_slice %40 {offsets = [2, 0, 0], sizes = [8, 16, 24], strides = [1, 1, 1]} : vector<10x16x24xf32> to vector<8x16x24xf32>
    %93 = vector.extract_strided_slice %48 {offsets = [2, 0, 0], sizes = [1, 1, 24], strides = [1, 1, 1]} : vector<3x3x24xf32> to vector<1x1x24xf32>
    %94 = vector.shape_cast %93 : vector<1x1x24xf32> to vector<24xf32>
    %95 = vector.shape_cast %94 : vector<24xf32> to vector<1x1x24xf32>
    %96 = vector.broadcast %95 : vector<1x1x24xf32> to vector<8x16x24xf32>
    %97 = arith.mulf %92, %96 : vector<8x16x24xf32>
    %98 = arith.addf %91, %97 : vector<8x16x24xf32>
    %99 = vector.extract_strided_slice %32 {offsets = [2, 0, 0], sizes = [8, 16, 24], strides = [1, 1, 1]} : vector<10x16x24xf32> to vector<8x16x24xf32>
    %100 = vector.extract_strided_slice %48 {offsets = [2, 1, 0], sizes = [1, 1, 24], strides = [1, 1, 1]} : vector<3x3x24xf32> to vector<1x1x24xf32>
    %101 = vector.shape_cast %100 : vector<1x1x24xf32> to vector<24xf32>
    %102 = vector.shape_cast %101 : vector<24xf32> to vector<1x1x24xf32>
    %103 = vector.broadcast %102 : vector<1x1x24xf32> to vector<8x16x24xf32>
    %104 = arith.mulf %99, %103 : vector<8x16x24xf32>
    %105 = arith.addf %98, %104 : vector<8x16x24xf32>
    %106 = vector.extract_strided_slice %47 {offsets = [2, 0, 0], sizes = [8, 16, 24], strides = [1, 1, 1]} : vector<10x16x24xf32> to vector<8x16x24xf32>
    %107 = vector.extract_strided_slice %48 {offsets = [2, 2, 0], sizes = [1, 1, 24], strides = [1, 1, 1]} : vector<3x3x24xf32> to vector<1x1x24xf32>
    %108 = vector.shape_cast %107 : vector<1x1x24xf32> to vector<24xf32>
    %109 = vector.shape_cast %108 : vector<24xf32> to vector<1x1x24xf32>
    %110 = vector.broadcast %109 : vector<1x1x24xf32> to vector<8x16x24xf32>
    %111 = arith.mulf %106, %110 : vector<8x16x24xf32>
    %112 = arith.addf %105, %111 : vector<8x16x24xf32>
    %c0_20 = arith.constant 0 : index
    %c0_21 = arith.constant 0 : index
    %113 = vector.load %arg7[%c0_20, %c0_21] : memref<1x24xf32, #tpu.memory_space<vmem>>, vector<1x24xf32>
    %114 = vector.shape_cast %113 : vector<1x24xf32> to vector<1x1x24xf32>
    %115 = vector.broadcast %114 : vector<1x1x24xf32> to vector<8x16x24xf32>
    %116 = arith.mulf %112, %115 : vector<8x16x24xf32>
    %c0_22 = arith.constant 0 : index
    %c0_23 = arith.constant 0 : index
    %117 = vector.load %arg8[%c0_22, %c0_23] : memref<1x24xf32, #tpu.memory_space<vmem>>, vector<1x24xf32>
    %118 = vector.shape_cast %117 : vector<1x24xf32> to vector<1x1x24xf32>
    %119 = vector.broadcast %118 : vector<1x1x24xf32> to vector<8x16x24xf32>
    %120 = arith.addf %116, %119 : vector<8x16x24xf32>
    %cst_24 = arith.constant 0.000000e+00 : f32
    %cst_25 = arith.constant 6.000000e+00 : f32
    %121 = vector.broadcast %cst_24 : f32 to vector<8x16x24xf32>
    %122 = arith.maximumf %121, %120 : vector<8x16x24xf32>
    %123 = vector.broadcast %cst_25 : f32 to vector<8x16x24xf32>
    %124 = arith.minimumf %123, %122 : vector<8x16x24xf32>
    %125 = vector.shape_cast %124 : vector<8x16x24xf32> to vector<128x24xf32>
    %126 = arith.truncf %125 : vector<128x24xf32> to vector<128x24xbf16>
    %c0_26 = arith.constant 0 : index
    %c0_27 = arith.constant 0 : index
    %127 = vector.load %arg9[%c0_26, %c0_27] : memref<24x4xbf16, #tpu.memory_space<vmem>>, vector<24x4xbf16>
    %cst_28 = arith.constant dense<0.000000e+00> : vector<128x4xf32>
    %128 = tpu.matmul %126, %127, %cst_28 {dimension_numbers = #tpu.dot_dimension_numbers<[1], [0], [0], [1], [0, 0, 1, 1], [], []>} : vector<128x24xbf16>, vector<24x4xbf16>, vector<128x4xf32> -> vector<128x4xf32>
    %c0_29 = arith.constant 0 : index
    %c0_30 = arith.constant 0 : index
    %129 = vector.load %arg10[%c0_29, %c0_30] : memref<1x4xf32, #tpu.memory_space<vmem>>, vector<1x4xf32>
    %130 = vector.broadcast %129 : vector<1x4xf32> to vector<128x4xf32>
    %131 = arith.mulf %128, %130 : vector<128x4xf32>
    %c0_31 = arith.constant 0 : index
    %c0_32 = arith.constant 0 : index
    %132 = vector.load %arg11[%c0_31, %c0_32] : memref<1x4xf32, #tpu.memory_space<vmem>>, vector<1x4xf32>
    %133 = vector.broadcast %132 : vector<1x4xf32> to vector<128x4xf32>
    %134 = arith.addf %131, %133 : vector<128x4xf32>
    %135 = vector.shape_cast %134 : vector<128x4xf32> to vector<8x16x4xf32>
    %136 = vector.extract_strided_slice %5 {offsets = [1, 0, 0], sizes = [8, 16, 4], strides = [1, 1, 1]} : vector<10x16x4xf32> to vector<8x16x4xf32>
    %137 = arith.addf %135, %136 : vector<8x16x4xf32>
    %138 = vector.shape_cast %137 : vector<8x16x4xf32> to vector<1x8x16x4xf32>
    %c0_33 = arith.constant 0 : index
    %c0_34 = arith.constant 0 : index
    %c0_35 = arith.constant 0 : index
    %c0_36 = arith.constant 0 : index
    %139 = vector.load %arg12[%c0_33, %c0_34, %c0_35, %c0_36] : memref<1x8x16x4xf32, #tpu.memory_space<vmem>>, vector<1x8x16x4xf32>
    tpu.vector_store %arg12[%c0_33, %c0_34, %c0_35, %c0_36], %138 {strides = array<i32>} : memref<1x8x16x4xf32, #tpu.memory_space<vmem>>, vector<1x8x16x4xf32>,
    return
  }
  func.func @transform_0(%arg0: i32, %arg1: i32) -> (i32, i32, i32, i32) {
    %c0_i32 = arith.constant 0 : i32
    %c0_i32_0 = arith.constant 0 : i32
    %c0_i32_1 = arith.constant 0 : i32
    %c0_i32_2 = arith.constant 0 : i32
    return %arg0, %c0_i32, %c0_i32_0, %c0_i32_1 : i32, i32, i32, i32
  }
  func.func @transform_1(%arg0: i32, %arg1: i32) -> (i32, i32) {
    %c0_i32 = arith.constant 0 : i32
    %c0_i32_0 = arith.constant 0 : i32
    %c0_i32_1 = arith.constant 0 : i32
    return %c0_i32, %c0_i32_0 : i32, i32
  }
  func.func @transform_2(%arg0: i32, %arg1: i32) -> (i32, i32) {
    %c0_i32 = arith.constant 0 : i32
    %c0_i32_0 = arith.constant 0 : i32
    %c0_i32_1 = arith.constant 0 : i32
    return %c0_i32, %c0_i32_0 : i32, i32
  }
  func.func @transform_3(%arg0: i32, %arg1: i32) -> (i32, i32) {
    %c0_i32 = arith.constant 0 : i32
    %c0_i32_0 = arith.constant 0 : i32
    %c0_i32_1 = arith.constant 0 : i32
    return %c0_i32, %c0_i32_0 : i32, i32
  }
  func.func @transform_4(%arg0: i32, %arg1: i32) -> (i32, i32, i32) {
    %c0_i32 = arith.constant 0 : i32
    %c0_i32_0 = arith.constant 0 : i32
    %c0_i32_1 = arith.constant 0 : i32
    %c0_i32_2 = arith.constant 0 : i32
    return %c0_i32, %c0_i32_0, %c0_i32_1 : i32, i32, i32
  }
  func.func @transform_5(%arg0: i32, %arg1: i32) -> (i32, i32) {
    %c0_i32 = arith.constant 0 : i32
    %c0_i32_0 = arith.constant 0 : i32
    %c0_i32_1 = arith.constant 0 : i32
    return %c0_i32, %c0_i32_0 : i32, i32
  }
  func.func @transform_6(%arg0: i32, %arg1: i32) -> (i32, i32) {
    %c0_i32 = arith.constant 0 : i32
    %c0_i32_0 = arith.constant 0 : i32
    %c0_i32_1 = arith.constant 0 : i32
    return %c0_i32, %c0_i32_0 : i32, i32
  }
  func.func @transform_7(%arg0: i32, %arg1: i32) -> (i32, i32) {
    %c0_i32 = arith.constant 0 : i32
    %c0_i32_0 = arith.constant 0 : i32
    %c0_i32_1 = arith.constant 0 : i32
    return %c0_i32, %c0_i32_0 : i32, i32
  }
  func.func @transform_8(%arg0: i32, %arg1: i32) -> (i32, i32) {
    %c0_i32 = arith.constant 0 : i32
    %c0_i32_0 = arith.constant 0 : i32
    %c0_i32_1 = arith.constant 0 : i32
    return %c0_i32, %c0_i32_0 : i32, i32
  }
  func.func @transform_9(%arg0: i32, %arg1: i32) -> (i32, i32) {
    %c0_i32 = arith.constant 0 : i32
    %c0_i32_0 = arith.constant 0 : i32
    %c0_i32_1 = arith.constant 0 : i32
    return %c0_i32, %c0_i32_0 : i32, i32
  }
  func.func @transform_10(%arg0: i32, %arg1: i32) -> (i32, i32, i32, i32) {
    %c0_i32 = arith.constant 0 : i32
    %c0_i32_0 = arith.constant 0 : i32
    %c0_i32_1 = arith.constant 0 : i32
    return %arg0, %arg1, %c0_i32, %c0_i32_0 : i32, i32, i32, i32
  }
}

</mosaic_0001>

<bundles_post_ra>
// kernel: tpu_custom_call.1
= control target key start
LH: loop header
LB: loop body
LE: loop exit
PB: predicated region body
PF: predicated region fallthrough
CT: control target
= control target key end

     0   :  { %s1652_s13 = smov 0   ;;  %s1654_s14 = smov 0   ;;  %s2841_s0 = inlined_call_operand.vmem [shape: f32[2,18,16,4], index: 0, kind: input, shape index: {}]   ;;  %s2842_s1 = inlined_call_operand.vmem [shape: bf16[4,24], index: 1, kind: input, shape index: {}]   ;;  %s2843_s2 = inlined_call_operand.vmem [shape: f32[1,24], index: 2, kind: input, shape index: {}]   ;;  %s2844_s3 = inlined_call_operand.vmem [shape: f32[1,24], index: 3, kind: input, shape index: {}]   ;;  %s2845_s4 = inlined_call_operand.vmem [shape: f32[3,3,24], index: 4, kind: input, shape index: {}]   ;;  %s2846_s5 = inlined_call_operand.vmem [shape: f32[1,24], index: 5, kind: input, shape index: {}]   ;;  %s2847_s6 = inlined_call_operand.vmem [shape: f32[1,24], index: 6, kind: input, shape index: {}]   ;;  %s2848_s7 = inlined_call_operand.vmem [shape: bf16[24,4], index: 7, kind: input, shape index: {}]   ;;  %s2849_s8 = inlined_call_operand.vmem [shape: f32[1,4], index: 8, kind: input, shape index: {}]   ;;  %s2850_s9 = inlined_call_operand.vmem [shape: f32[1,4], index: 9, kind: input, shape index: {}]   ;;  %s2851_s10 = inlined_call_operand.vmem [shape: f32[2,16,16,4], index: 10, kind: output, shape index: {}]  }
   0x1   :  { %s1656_s15 = smov 0   ;;  %s1658_s16 = smov 0  }
   0x2   :  { %s1660_s17 = smov 0  }
   0x3 LB: > { %s29_s18 = sadd.s32 1, %s1587_s15  ;;  %s32_s19 = sadd.s32 1, %s1591_s16  ;;  %s1595_s17 = sphi %s1660_s17, %s20_s17   ;;  %s1591_s16 = sphi %s1658_s16, %s2993_s16   ;;  %s1587_s15 = sphi %s1656_s15, %s2992_s15   ;;  %s1583_s14 = sphi %s1654_s14, %s2991_s14   ;;  %s1579_s13 = sphi %s1652_s13, %s2990_s13  }
   0x4   : > { %p30_p0 = scmp.ge.s32.totalorder %s29_s18, 2  ;;  %p1457_p1 = scmp.ge.s32.totalorder %s1595_s17, 1 }
   0x5   : > { %p326_p2 = scmp.lt.s32.totalorder %s1595_s17, 5 }
   0x6   : > { %s2995_s18 = smov (%p30_p0, %s29_s18), 0  ;;  %s2997_s19 = smov (!%p30_p0, %s32_s19), %s1591_s16 }
   0x7   : > { %p327_p3 = pnand %p1457_p1, %p326_p2  ;;  %p34_p4 = scmp.ge.s32.totalorder %s2997_s19, 2 }
   0x9   : > { %s2999_s19 = smov (%p34_p4, %s2997_s19), 0  ;;  %330 = sbr.rel (%p327_p3) target bundleno = 477 (0x1dd), region = 60 }
   0xe   : > { %v419_v0 = vld [vmem:[%s2842_s1] sm:$0x3]  ;;  %vm451_vm0 = vcmask 1041408   ;;  %p369_p5 = scmp.lt.s32.totalorder %s1583_s14, 1  ;;  %s1489_s23 = sshll.u32 %s1579_s13, 7  ;;  %vm420_vm1 = vcmask 31744   ;;  %v682_v43 = vlaneseq }
   0xf   : > { %v453_v1 = vsel %vm451_vm0, %v419_v0, 0  ;;  %v1729_v32 = vld [vmem:[%s2843_s2] ss:$0 sm:$0xff]  ;;  %s1738_s12 = sshll.u32 %s1579_s13, 3  ;;  %v820_v57 = vld [vmem:[%s2845_s4 + $0x4] sm:$0x7] }
  0x10   : > { %462 = vmatpush.bf16.msra.mxu0 %v453_v1  ;;  %1491 = vmatpush.bf16.msra.mxu2 %v453_v1  ;;  %s3001_s14 = smov (!%p369_p5, %s1583_s14), 1  ;;  %v1734_v34 = vld [vmem:[%s2844_s3] ss:$0 sm:$0xff]  ;;  %v1742_v37 = vstv %s1738_s12  ;;  %v1758_v52 = vshrl.u32 %v682_v43, 7  ;;  %v1773_v62 = vld [vmem:[%s2845_s4 + $0x8] sm:$0x7] }
  0x11   : > { %s1494_s22 = smul.u32 288, %s3001_s14  ;;  %vm612_vm2 = vcmp.eq.s32.totalorder %v1742_v37, 0  ;;  %vm622_vm3 = vcmp.eq.s32.totalorder %v1742_v37, 17  ;;  %v607_v45 = vadd.s32 5, %v1742_v37  ;;  %v819_v49 = vld [vmem:[%s2845_s4] sm:$0x7] }
  0x12   : > { %vm1751_vm4 = vmor %vm612_vm2, %vm622_vm3  ;;  %v1762_v56 = vperm.slane %v819_v49, 1  ;;  %v1768_v60 = vperm.slane %v819_v49, 2  ;;  %v1775_v63 = vperm.slane %v820_v57, 0  ;;  %v1778_v0 = vadd.s32 8, %v1758_v52  ;;  %p377_p6 = scmp.lt.s32.totalorder %s1738_s12, 15 }
  0x13   : > { %s373_s26 = scalar_lea.vmem %s2841_s0, %s1494_s22  ;;  %vm617_vm5 = vcmp.eq.s32.totalorder %v607_v45, 0  ;;  %vm627_vm6 = vcmp.eq.s32.totalorder %v607_v45, 17  ;;  %vm707_vm8 = vcmp.lt.s32.totalorder %v1758_v52, 1  ;;  %vm685_vm9 = vcmp.eq.s32.totalorder %v1758_v52, 0  ;;  %s1461_s22 = sshll.u32 %s3001_s14, 5 }
  0x14   : > { %s1694_s27 = scalar_lea.vmem %s373_s26, %s1489_s23  ;;  %vm1780_vm7 = vmor %vm617_vm5, %vm627_vm6  ;;  %vm753_vm10 = vcmp.eq.s32.totalorder %v1778_v0, 15  ;;  %vm774_vm11 = vcmp.lt.s32.totalorder %v1758_v52, 7  ;;  %s3003_s12 = smov (!%p377_p6, %s1738_s12), 15 }
  0x15   : > { %v389_v2 = vld [vmem:[%s1694_s27] sm:$0xff]  ;;  %v390_v3 = vld [vmem:[%s1694_s27 + $0x8] sm:$0xff]  ;;  %v399_v4 = vld [vmem:[%s1694_s27 + $0x50] sm:$0xff]  ;;  %s1460_s21 = sshll.u32 %s3003_s12, 1 }
  0x16   : > { %v409_v5 = vpack.c.bf16 %v390_v3, %v389_v2  ;;  %v400_v6 = vld [vmem:[%s1694_s27 + $0x58] sm:$0xff]  ;;  %v391_v8 = vld [vmem:[%s1694_s27 + $0x10] sm:$0xff]  ;;  %v401_v10 = vld [vmem:[%s1694_s27 + $0x60] sm:$0xff]  ;;  %s381_s25 = sadd.s32 %s1461_s22, %s1460_s21 }
  0x17   : > { %v414_v7 = vpack.c.bf16 %v400_v6, %v399_v4  ;;  %v392_v9 = vld [vmem:[%s1694_s27 + $0x18] sm:$0xff]  ;;  %v402_v11 = vld [vmem:[%s1694_s27 + $0x68] sm:$0xff]  ;;  %v393_v14 = vld [vmem:[%s1694_s27 + $0x20] sm:$0xff]  ;;  %v1789_v6 = vperm.slane %v820_v57, 1  ;;  %s1462_s29 = sshll.u32 %s381_s25, 3 }
  0x18   : > { %1465 = vmatmul.msk.bf16.vlgmr.msra.gmra.mxu0 %vm420_vm1, %v409_v5  ;;  %v410_v12 = vpack.c.bf16 %v392_v9, %v391_v8  ;;  %v415_v13 = vpack.c.bf16 %v402_v11, %v401_v10  ;;  %v394_v15 = vld [vmem:[%s1694_s27 + $0x28] sm:$0xff]  ;;  %v403_v16 = vld [vmem:[%s1694_s27 + $0x70] sm:$0xff]  ;;  %v404_v17 = vld [vmem:[%s1694_s27 + $0x78] sm:$0xff]  ;;  %v603_v8 = vadd.s32 1, %v1742_v37  ;;  %v1792_v9 = vperm.slane %v820_v57, 2  ;;  %s2746_s30 = scalar_lea.vmem %s2851_s10, %s1462_s29 }
  0x19   : > { %1470 = vmatmul.msk.bf16.vlgmr.msra.gmra.mxu2 %vm420_vm1, %v414_v7  ;;  %v411_v18 = vpack.c.bf16 %v394_v15, %v393_v14  ;;  %v416_v19 = vpack.c.bf16 %v404_v17, %v403_v16  ;;  %v395_v20 = vld [vmem:[%s1694_s27 + $0x30] sm:$0xff]  ;;  %v396_v21 = vld [vmem:[%s1694_s27 + $0x38] sm:$0xff]  ;;  %v405_v22 = vld [vmem:[%s1694_s27 + $0x80] sm:$0xff]  ;;  %v1795_v10 = vperm.slane %v1773_v62, 1  ;;  %v1810_v17 = vperm.slane %v819_v49, 0 }
  0x1a   : > { %v406_v23 = vld [vmem:[%s1694_s27 + $0x88] sm:$0xff]  ;;  %v412_v24 = vpack.c.bf16 %v396_v21, %v395_v20  ;;  %v397_v26 = vld [vmem:[%s1694_s27 + $0x40] sm:$0xff]  ;;  %v407_v28 = vld [vmem:[%s1694_s27 + $0x90] sm:$0xff]  ;;  %vm613_vm12 = vcmp.eq.s32.totalorder %v603_v8, 0  ;;  %vm623_vm13 = vcmp.eq.s32.totalorder %v603_v8, 17 }
  0x1b   : > { %v417_v25 = vpack.c.bf16 %v406_v23, %v405_v22  ;;  %v398_v27 = vld [vmem:[%s1694_s27 + $0x48] sm:$0xff]  ;;  %v408_v29 = vld [vmem:[%s1694_s27 + $0x98] sm:$0xff]  ;;  %vm1865_vm0 = vmor %vm613_vm12, %vm623_vm13 }
  0x1c   : > { %v413_v30 = vpack.c.bf16 %v398_v27, %v397_v26  ;;  %v418_v31 = vpack.c.bf16 %v408_v29, %v407_v28 }
  0x28   : > { %1466 = vmatmul.msk.bf16.gmra.mxu0 %vm420_vm1, %v410_v12  ;;  %v1798_v12 = vadd.s32 6, %v1742_v37 }
  0x29   : > { %1471 = vmatmul.msk.bf16.gmra.mxu2 %vm420_vm1, %v415_v13 }
  0x2a   : > { %vm618_vm14 = vcmp.eq.s32.totalorder %v1798_v12, 0  ;;  %vm628_vm15 = vcmp.eq.s32.totalorder %v1798_v12, 17 }
  0x38   : > { %1467 = vmatmul.msk.bf16.gmra.mxu0 %vm420_vm1, %v411_v18 }
  0x39   : > { %1472 = vmatmul.msk.bf16.gmra.mxu2 %vm420_vm1, %v416_v19 }
  0x48   : > { %1468 = vmatmul.msk.bf16.gmra.mxu0 %vm420_vm1, %v412_v24 }
  0x49   : > { %1473 = vmatmul.msk.bf16.gmra.mxu2 %vm420_vm1, %v417_v25 }
  0x58   : > { %1469 = vmatmul.msk.bf16.gmra.mxu0 %vm420_vm1, %v413_v30 }
  0x59   : > { %1474 = vmatmul.msk.bf16.gmra.mxu2 %vm420_vm1, %v418_v31 }
  0x95   : > { %v464_v33 = vpop.f32.mrf.mxu0 }
  0x96   : > { %v518_v35 = vmul.f32 %v1729_v32, %v464_v33  ;;  %v1830_v33 = vadd.s32 2, %v1742_v37 }
  0x98   : > { %v542_v36 = vadd.f32 %v1734_v34, %v518_v35  ;;  %vm614_vm2 = vcmp.eq.s32.totalorder %v1830_v33, 0  ;;  %vm624_vm3 = vcmp.eq.s32.totalorder %v1830_v33, 17 }
  0x99   : > { %vm1949_vm5 = vmor %vm614_vm2, %vm624_vm3 }
  0x9a   : > { %v562_v39 = vmax.f32 %v542_v36, 0.0 }
  0x9c   : > { %v489_v38 = vpop.f32.mrf.mxu2  ;;  %v582_v47 = vmin.f32 %v562_v39, 6.0 }
  0x9d   : > { %v528_v40 = vmul.f32 %v1729_v32, %v489_v38  ;;  %v466_v41 = vpop.f32.mrf.mxu0 }
  0x9e   : > { %v519_v42 = vmul.f32 %v1729_v32, %v466_v41  ;;  %v662_v55 = vsel %vm1751_vm4, 0.0, %v582_v47 }
  0x9f   : > { %v552_v44 = vadd.f32 %v1734_v34, %v528_v40  ;;  %v687_v5 = vrot.slane %v662_v55, 7  ;;  %v754_v18 = vrot.slane %v662_v55, 1  ;;  %v856_v26 = vmul.f32 %v1762_v56, %v662_v55 }
  0xa0   : > { %v543_v46 = vadd.f32 %v1734_v34, %v519_v42 }
  0xa1   : > { %v572_v50 = vmax.f32 %v552_v44, 0.0 }
  0xa2   : > { %v563_v51 = vmax.f32 %v543_v46, 0.0 }
  0xa3   : > { %v592_v61 = vmin.f32 %v572_v50, 6.0 }
  0xa4   : > { %v583_v53 = vmin.f32 %v563_v51, 6.0  ;;  %v491_v54 = vpop.f32.mrf.mxu2 }
  0xa5   : > { %v529_v58 = vmul.f32 %v1729_v32, %v491_v54  ;;  %v469_v59 = vpop.f32.mrf.mxu0  ;;  %v1802_v13 = vsel %vm1780_vm7, 0.0, %v592_v61 }
  0xa6   : > { %v663_v2 = vsel %vm1751_vm4, 0.0, %v583_v53  ;;  %v520_v4 = vmul.f32 %v1729_v32, %v469_v59  ;;  %v692_v21 = vrot.slane %v1802_v13, 7  ;;  %v759_v22 = vrot.slane %v1802_v13, 1  ;;  %vm1897_vm4 = vmor %vm618_vm14, %vm628_vm15 }
  0xa7   : > { %v553_v3 = vadd.f32 %v1734_v34, %v529_v58  ;;  %v697_v7 = vrot.slane %v663_v2, 7  ;;  %v764_v16 = vrot.slane %v663_v2, 1  ;;  %v866_v35 = vmul.f32 %v1762_v56, %v1802_v13 }
  0xa8   : > { %v544_v15 = vadd.f32 %v1734_v34, %v520_v4  ;;  %v1856_v48 = vmul.f32 %v1789_v6, %v1802_v13  ;;  %v857_v49 = vmul.f32 %v1762_v56, %v663_v2 }
  0xa9   : > { %v573_v11 = vmax.f32 %v553_v3, 0.0  ;;  %v718_v14 = vsel %vm707_vm8, %v697_v7, %v687_v5  ;;  %v708_v23 = vsel %vm707_vm8, %v687_v5, %v697_v7  ;;  %v785_v29 = vsel %vm774_vm11, %v764_v16, %v754_v18 }
  0xaa   : > { %v732_v24 = vsel %vm685_vm9, 0.0, %v718_v14  ;;  %v564_v28 = vmax.f32 %v544_v15, 0.0  ;;  %v775_v36 = vsel %vm774_vm11, %v754_v18, %v764_v16  ;;  %v824_v39 = vmul.f32 %v1810_v17, %v708_v23  ;;  %2882 = vst [vmem:[#allocation5_spill] sm:$0xff] %v1856_v48 }
  0xab   : > { %v593_v19 = vmin.f32 %v573_v11, 6.0  ;;  %v823_v38 = vmul.f32 %v1810_v17, %v732_v24  ;;  %v800_v44 = vsel %vm753_vm10, 0.0, %v785_v29  ;;  %v889_v54 = vmul.f32 %v1768_v60, %v775_v36 }
  0xac   : > { %v494_v20 = vpop.f32.mrf.mxu2  ;;  %v584_v46 = vmin.f32 %v564_v28, 6.0  ;;  %v873_v1 = vadd.f32 %v857_v49, %v824_v39  ;;  %v890_v2 = vmul.f32 %v1768_v60, %v800_v44  ;;  %v1905_v24 = vmul.f32 %v1795_v10, %v1802_v13 }
  0xad   : > { %v471_v25 = vpop.f32.mrf.mxu0  ;;  %v1822_v27 = vsel %vm1780_vm7, 0.0, %v593_v19  ;;  %v530_v43 = vmul.f32 %v1729_v32, %v494_v20  ;;  %v872_v61 = vadd.f32 %v856_v26, %v823_v38  ;;  %v1908_v28 = vperm.slane %v1773_v62, 0 }
  0xae   : > { %2879 = vst [vmem:[#allocation2_spill] sm:$0xff] %v1822_v27  ;;  %v702_v30 = vrot.slane %v1822_v27, 7  ;;  %v769_v31 = vrot.slane %v1822_v27, 1  ;;  %v521_v47 = vmul.f32 %v1729_v32, %v471_v25  ;;  %v867_v51 = vmul.f32 %v1762_v56, %v1822_v27 }
  0xaf   : > { %v554_v3 = vadd.f32 %v1734_v34, %v530_v43  ;;  %v664_v5 = vsel %vm1865_vm0, 0.0, %v584_v46  ;;  %2889 = vst [vmem:[#allocation8_spill] sm:$0xff] %v1905_v24  ;;  %v906_v25 = vadd.f32 %v890_v2, %v873_v1  ;;  %v1910_v29 = vadd.f32 %v889_v54, %v872_v61 }
  0xb0   : > { %v1840_v40 = vsel %vm707_vm8, %v692_v21, %v702_v30  ;;  %v723_v41 = vsel %vm707_vm8, %v702_v30, %v692_v21  ;;  %v790_v42 = vsel %vm774_vm11, %v769_v31, %v759_v22  ;;  %v1872_v55 = vsel %vm774_vm11, %v759_v22, %v769_v31 }
  0xb1   : > { %2880 = vst [vmem:[#allocation3_spill] sm:$0xff] %v1840_v40  ;;  %v1851_v45 = vsel %vm685_vm9, 0.0, %v723_v41  ;;  %v834_v50 = vmul.f32 %v1810_v17, %v1840_v40  ;;  %v1876_v57 = vsel %vm753_vm10, 0.0, %v790_v42  ;;  %v545_v7 = vadd.f32 %v1734_v34, %v521_v47 }
  0xb2   : > { %2881 = vst [vmem:[#allocation4_spill] sm:$0xff] %v1851_v45  ;;  %v833_v58 = vmul.f32 %v1810_v17, %v1851_v45  ;;  %v899_v15 = vmul.f32 %v1768_v60, %v1872_v55  ;;  %v900_v16 = vmul.f32 %v1768_v60, %v1876_v57  ;;  %v574_v18 = vmax.f32 %v554_v3, 0.0 }
  0xb3   : > { %2885 = vst [vmem:[#allocation6_spill] sm:$0xff] %v1872_v55  ;;  %v883_v14 = vadd.f32 %v867_v51, %v834_v50  ;;  %v565_v21 = vmax.f32 %v545_v7, 0.0  ;;  %v755_v36 = vrot.slane %v664_v5, 1  ;;  %v858_v38 = vmul.f32 %v1762_v56, %v664_v5 }
  0xb4   : > { %2886 = vst [vmem:[#allocation7_spill] sm:$0xff] %v1876_v57  ;;  %v496_v59 = vpop.f32.mrf.mxu2  ;;  %v882_v19 = vadd.f32 %v866_v35, %v833_v58  ;;  %v594_v26 = vmin.f32 %v574_v18, 6.0  ;;  %v688_v35 = vrot.slane %v664_v5, 7  ;;  %v1922_v42 = vmul.f32 %v1789_v6, %v664_v5 }
  0xb5   : > { %v474_v4 = vpop.f32.mrf.mxu0  ;;  %v531_v8 = vmul.f32 %v1729_v32, %v496_v59  ;;  %v585_v12 = vmin.f32 %v565_v21, 6.0  ;;  %v1919_v41 = vadd.f32 %v900_v16, %v883_v14  ;;  %v1925_v44 = vadd.s32 7, %v1742_v37 }
  0xb6   : > { %v522_v11 = vmul.f32 %v1729_v32, %v474_v4  ;;  %v1915_v39 = vsel %vm1897_vm4, 0.0, %v594_v26  ;;  %v1917_v13 = vadd.f32 %v899_v15, %v882_v19  ;;  %v1931_v51 = vadd.s32 3, %v1742_v37 }
  0xb7   : > { %v555_v22 = vadd.f32 %v1734_v34, %v531_v8  ;;  %2890 = vst [vmem:[#allocation9_spill] sm:$0xff] %v1915_v39  ;;  %v693_v46 = vrot.slane %v1915_v39, 7  ;;  %v665_v47 = vsel %vm1865_vm0, 0.0, %v585_v12  ;;  %v760_v54 = vrot.slane %v1915_v39, 1 }
  0xb8   : > { %v546_v23 = vadd.f32 %v1734_v34, %v522_v11  ;;  %v698_v58 = vrot.slane %v665_v47, 7  ;;  %v765_v59 = vrot.slane %v665_v47, 1  ;;  %v868_v1 = vmul.f32 %v1762_v56, %v1915_v39 }
  0xb9   : > { %v575_v30 = vmax.f32 %v555_v22, 0.0  ;;  %v1938_v2 = vmul.f32 %v1789_v6, %v1915_v39  ;;  %v859_v53 = vmul.f32 %v1762_v56, %v665_v47  ;;  %v956_v16 = vmul.f32 %v1789_v6, %v665_v47 }
  0xba   : > { %v566_v31 = vmax.f32 %v546_v23, 0.0  ;;  %v709_v5 = vsel %vm707_vm8, %v688_v35, %v698_v58  ;;  %v719_v7 = vsel %vm707_vm8, %v698_v58, %v688_v35  ;;  %v776_v8 = vsel %vm774_vm11, %v755_v36, %v765_v59 }
  0xbb   : > { %v595_v49 = vmin.f32 %v575_v30, 6.0  ;;  %v786_v11 = vsel %vm774_vm11, %v765_v59, %v755_v36  ;;  %v734_v14 = vsel %vm685_vm9, 0.0, %v719_v7  ;;  %v826_v15 = vmul.f32 %v1810_v17, %v709_v5 }
  0xbc   : > { %v499_v43 = vpop.f32.mrf.mxu2  ;;  %v586_v61 = vmin.f32 %v566_v31, 6.0  ;;  %v802_v33 = vsel %vm753_vm10, 0.0, %v786_v11  ;;  %v825_v18 = vmul.f32 %v1810_v17, %v734_v14  ;;  %v923_v19 = vmul.f32 %v1775_v63, %v709_v5 }
  0xbd   : > { %v476_v50 = vpop.f32.mrf.mxu0  ;;  %v1943_v3 = vsel %vm1897_vm4, 0.0, %v595_v49  ;;  %v532_v21 = vmul.f32 %v1729_v32, %v499_v43  ;;  %v891_v22 = vmul.f32 %v1768_v60, %v776_v8  ;;  %v892_v23 = vmul.f32 %v1768_v60, %v802_v33 }
  0xbe   : > { %2891 = vst [vmem:[#allocation10_spill] sm:$0xff] %v1943_v3  ;;  %v1971_v20 = vsel %vm1949_vm5, 0.0, %v586_v61  ;;  %v703_v26 = vrot.slane %v1943_v3, 7  ;;  %v523_v12 = vmul.f32 %v1729_v32, %v476_v50  ;;  %v875_v30 = vadd.f32 %v859_v53, %v826_v15 }
  0xbf   : > { %v922_v31 = vmul.f32 %v1775_v63, %v734_v14  ;;  %v939_v35 = vadd.f32 %v923_v19, %v906_v25  ;;  %v770_v36 = vrot.slane %v1943_v3, 1  ;;  %v1981_v49 = vmul.f32 %v1792_v9, %v776_v8 }
  0xc0   : > { %v1985_v43 = vsel %vm707_vm8, %v693_v46, %v703_v26  ;;  %v724_v58 = vsel %vm707_vm8, %v703_v26, %v693_v46  ;;  %v869_v50 = vmul.f32 %v1762_v56, %v1943_v3  ;;  %vm619_vm6 = vcmp.eq.s32.totalorder %v1925_v44, 0 }
  0xc1   : > { %2894 = vst [vmem:[#allocation11_spill] sm:$0xff] %v1985_v43  ;;  %vm629_vm7 = vcmp.eq.s32.totalorder %v1925_v44, 17  ;;  %v874_v59 = vadd.f32 %v858_v38, %v825_v18  ;;  %v972_v61 = vadd.f32 %v956_v16, %v939_v35  ;;  %v1995_v53 = vsel %vm685_vm9, 0.0, %v724_v58 }
  0xc2   : > { %2895 = vst [vmem:[#allocation12_spill] sm:$0xff] %v1995_v53  ;;  %v1999_v5 = vsel %vm774_vm11, %v760_v54, %v770_v36  ;;  %v791_v46 = vsel %vm774_vm11, %v770_v36, %v760_v54  ;;  %v835_v7 = vmul.f32 %v1810_v17, %v1995_v53  ;;  %v836_v8 = vmul.f32 %v1810_v17, %v1985_v43  ;;  %vm2072_vm14 = vmor %vm619_vm6, %vm629_vm7 }
  0xc3   : > { %2896 = vst [vmem:[#allocation13_spill] sm:$0xff] %v1999_v5  ;;  %v901_v38 = vmul.f32 %v1768_v60, %v1999_v5  ;;  %v2010_v11 = vadd.f32 %v922_v31, %v1910_v29  ;;  %v989_v14 = vmul.f32 %v1792_v9, %v802_v33  ;;  %v2015_v15 = vsel %vm753_vm10, 0.0, %v791_v46 }
  0xc4   : > { %v501_v47 = vpop.f32.mrf.mxu2  ;;  %2897 = vst [vmem:[#allocation14_spill] sm:$0xff] %v2015_v15  ;;  %v933_v54 = vmul.f32 %v1775_v63, %v1985_v43  ;;  %v884_v16 = vadd.f32 %v868_v1, %v835_v7  ;;  %v885_v18 = vadd.f32 %v869_v50, %v836_v8  ;;  %v902_v19 = vmul.f32 %v1768_v60, %v2015_v15 }
  0xc5   : > { %v479_v25 = vpop.f32.mrf.mxu0  ;;  %v966_v26 = vmul.f32 %v1789_v6, %v1943_v3  ;;  %v2023_v35 = vadd.f32 %v891_v22, %v874_v59  ;;  %v2025_v29 = vadd.f32 %v892_v23, %v875_v30  ;;  %v2027_v33 = vadd.f32 %v989_v14, %v972_v61 }
  0xc6   : > { %v949_v31 = vadd.f32 %v933_v54, %v1919_v41  ;;  %v2030_v36 = vadd.f32 %v901_v38, %v884_v16  ;;  %v2034_v1 = vmul.f32 %v1775_v63, %v1995_v53  ;;  %v2038_v58 = vmul.f32 %v1792_v9, %v1999_v5 }
  0xc7   : > { %2898 = vst [vmem:[#allocation15_spill] sm:$0xff] %v2023_v35  ;;  %v999_v22 = vmul.f32 %v1792_v9, %v2015_v15  ;;  %vm615_vm12 = vcmp.eq.s32.totalorder %v1931_v51, 0  ;;  %vm625_vm13 = vcmp.eq.s32.totalorder %v1931_v51, 17  ;;  %v2044_v23 = vadd.f32 %v902_v19, %v885_v18 }
  0xc8   : > { %2899 = vst [vmem:[#allocation16_spill] sm:$0xff] %v2030_v36  ;;  %v982_v41 = vadd.f32 %v966_v26, %v949_v31  ;;  %v689_v30 = vrot.slane %v1971_v20, 7  ;;  %v556_v59 = vadd.f32 %v1734_v34, %v532_v21  ;;  %v547_v61 = vadd.f32 %v1734_v34, %v523_v12  ;;  %vm2140_vm2 = vmor %vm615_vm12, %vm625_vm13 }
  0xc9   : > { %2900 = vst [vmem:[#allocation17_spill] sm:$0xff] %v2038_v58  ;;  %v533_v46 = vmul.f32 %v1729_v32, %v501_v47  ;;  %v524_v7 = vmul.f32 %v1729_v32, %v479_v25  ;;  %v2054_v14 = vmul.f32 %v1762_v56, %v1971_v20  ;;  %v2058_v54 = vmul.f32 %v1789_v6, %v1971_v20 }
  0xca   : > { %v576_v18 = vmax.f32 %v556_v59, 0.0  ;;  %v567_v12 = vmax.f32 %v547_v61, 0.0  ;;  %v2066_v19 = vmul.f32 %v1795_v10, %v1971_v20  ;;  %v2080_v59 = vadd.s32 8, %v1742_v37 }
  0xcb   : > { %2901 = vst [vmem:[#allocation18_spill] sm:$0xff] %v2058_v54  ;;  %v557_v47 = vadd.f32 %v1734_v34, %v533_v46  ;;  %v548_v25 = vadd.f32 %v1734_v34, %v524_v7  ;;  %v2088_v46 = vld [vmem:[%s2848_s7 + $0x8] sm:$0xf]  ;;  %v2090_v50 = vadd.f32 %v999_v22, %v982_v41  ;;  %v2095_v15 = vadd.s32 4, %v1742_v37 }
  0xcc   : > { %v504_v8 = vpop.f32.mrf.mxu2  ;;  %v596_v7 = vmin.f32 %v576_v18, 6.0  ;;  %v587_v44 = vmin.f32 %v567_v12, 6.0  ;;  %vm620_vm15 = vcmp.eq.s32.totalorder %v2080_v59, 0  ;;  %vm630_vm0 = vcmp.eq.s32.totalorder %v2080_v59, 17 }
  0xcd   : > { %v481_v38 = vpop.f32.mrf.mxu0  ;;  %v534_v16 = vmul.f32 %v1729_v32, %v504_v8  ;;  %v577_v8 = vmax.f32 %v557_v47, 0.0  ;;  %2904 = vst [vmem:[#allocation19_spill] sm:$0xff] %v2090_v50  ;;  %v2909_v43 = vrot.slane %v1971_v20, 1  ;;  %vm2240_vm3 = vmor %vm620_vm15, %vm630_vm0  ;;  %vm616_vm4 = vcmp.eq.s32.totalorder %v2095_v15, 0 }
  0xce   : > { %v525_v21 = vmul.f32 %v1729_v32, %v481_v38  ;;  %v568_v38 = vmax.f32 %v548_v25, 0.0  ;;  %v2103_v39 = vsel %vm1949_vm5, 0.0, %v587_v44  ;;  %vm626_vm5 = vcmp.eq.s32.totalorder %v2095_v15, 17 }
  0xcf   : > { %v2077_v31 = vadd.f32 %v1734_v34, %v534_v16  ;;  %v597_v18 = vmin.f32 %v577_v8, 6.0  ;;  %v861_v44 = vmul.f32 %v1762_v56, %v2103_v39  ;;  %v958_v8 = vmul.f32 %v1789_v6, %v2103_v39  ;;  %vm2338_vm7 = vmor %vm616_vm4, %vm626_vm5 }
  0xd0   : > { %v2083_v61 = vadd.f32 %v1734_v34, %v525_v21  ;;  %v2099_v21 = vsel %vm2072_vm14, 0.0, %v596_v7  ;;  %v588_v25 = vmin.f32 %v568_v38, 6.0  ;;  %v2130_v38 = vmul.f32 %v1795_v10, %v2103_v39 }
  0xd1   : > { %v578_v16 = vmax.f32 %v2077_v31, 0.0  ;;  %v694_v22 = vrot.slane %v2099_v21, 7  ;;  %v2110_v47 = vmul.f32 %v1762_v56, %v2099_v21  ;;  %v2116_v4 = vmul.f32 %v1789_v6, %v2099_v21 }
  0xd2   : > { %v569_v3 = vmax.f32 %v2083_v61, 0.0  ;;  %v2120_v31 = vmul.f32 %v1795_v10, %v2099_v21  ;;  %v699_v61 = vrot.slane %v2103_v39, 7  ;;  %v2134_v12 = vsel %vm2072_vm14, 0.0, %v597_v18 }
  0xd3   : > { %2905 = vst [vmem:[#allocation20_spill] sm:$0xff] %v2116_v4  ;;  %v2910_v26 = vrot.slane %v2103_v39, 1  ;;  %v704_v51 = vrot.slane %v2134_v12, 7  ;;  %v2868_v45 = vrot.slane %v2134_v12, 1  ;;  %vm1236_vm6 = vcmask 1043456  }
  0xd4   : > { %2906 = vst [vmem:[#allocation21_spill] sm:$0xff] %v2120_v31  ;;  %v2146_v7 = vsel %vm707_vm8, %v689_v30, %v699_v61  ;;  %v720_v5 = vsel %vm707_vm8, %v699_v61, %v689_v30  ;;  %vm1211_vm15 = vcmask 195584  }
  0xd5   : > { %v787_v18 = vsel %vm774_vm11, %v2910_v26, %v2909_v43  ;;  %v2159_v53 = vsel %vm685_vm9, 0.0, %v720_v5  ;;  %v828_v30 = vmul.f32 %v1810_v17, %v2146_v7  ;;  %v925_v61 = vmul.f32 %v1775_v63, %v2146_v7 }
  0xd6   : > { %v2163_v57 = vsel %vm753_vm10, 0.0, %v787_v18  ;;  %v2171_v48 = vmul.f32 %v1810_v17, %v2159_v53  ;;  %v2177_v5 = vmul.f32 %v1775_v63, %v2159_v53  ;;  %v2181_v26 = vsel %vm2140_vm2, 0.0, %v588_v25 }
  0xd7   : > { %v894_v43 = vmul.f32 %v1768_v60, %v2163_v57  ;;  %2912 = vst [vmem:[#allocation23_spill] sm:$0xff] %v2181_v26  ;;  %v877_v18 = vadd.f32 %v861_v44, %v828_v30  ;;  %v941_v24 = vadd.f32 %v925_v61, %v2025_v29  ;;  %v2186_v55 = vsel %vm707_vm8, %v694_v22, %v704_v51 }
  0xd8   : > { %2911 = vst [vmem:[#allocation22_spill] sm:$0xff] %v2177_v5  ;;  %v725_v27 = vsel %vm707_vm8, %v704_v51, %v694_v22  ;;  %v838_v25 = vmul.f32 %v1810_v17, %v2186_v55  ;;  %v871_v44 = vmul.f32 %v1762_v56, %v2134_v12  ;;  %v991_v61 = vmul.f32 %v1792_v9, %v2163_v57 }
  0xd9   : > { %2913 = vst [vmem:[#allocation24_spill] sm:$0xff] %v2186_v55  ;;  %v2192_v40 = vsel %vm685_vm9, 0.0, %v725_v27  ;;  %v910_v29 = vadd.f32 %v894_v43, %v877_v18  ;;  %v974_v30 = vadd.f32 %v958_v8, %v941_v24  ;;  %v2914_v27 = vrot.slane %v2099_v21, 1  ;;  %v506_v43 = vpop.f32.mrf.mxu2 }
  0xda   : > { %v2203_v22 = vmul.f32 %v1810_v17, %v2192_v40  ;;  %v2213_v4 = vmul.f32 %v1775_v63, %v2192_v40  ;;  %v935_v24 = vmul.f32 %v1775_v63, %v2186_v55  ;;  %v968_v8 = vmul.f32 %v1789_v6, %v2134_v12 }
  0xdb   : > { %v792_v51 = vsel %vm774_vm11, %v2868_v45, %v2914_v27  ;;  %v2219_v18 = vadd.f32 %v991_v61, %v974_v30  ;;  %v887_v54 = vadd.f32 %v871_v44, %v838_v25  ;;  %v2227_v27 = vmul.f32 %v1795_v10, %v2134_v12  ;;  %v484_v44 = vpop.f32.mrf.mxu0 }
  0xdc   : > { %2915 = vst [vmem:[#allocation25_spill] sm:$0xff] %v2213_v4  ;;  %v2223_v36 = vsel %vm753_vm10, 0.0, %v792_v51  ;;  %v951_v45 = vadd.f32 %v935_v24, %v2044_v23  ;;  %v690_v4 = vrot.slane %v2181_v26, 7  ;;  %v2234_v35 = vmul.f32 %v1762_v56, %v2181_v26 }
  0xdd   : > { %2916 = vst [vmem:[#allocation26_spill] sm:$0xff] %v2219_v18  ;;  %v2246_v23 = vmul.f32 %v1789_v6, %v2181_v26  ;;  %v598_v30 = vmin.f32 %v578_v16, 6.0  ;;  %v589_v61 = vmin.f32 %v569_v3, 6.0  ;;  %v535_v51 = vmul.f32 %v1729_v32, %v506_v43 }
  0xde   : > { %2917 = vst [vmem:[#allocation27_spill] sm:$0xff] %v2223_v36  ;;  %v984_v24 = vadd.f32 %v968_v8, %v951_v45  ;;  %v2251_v5 = vmul.f32 %v1795_v10, %v2181_v26  ;;  %v904_v59 = vmul.f32 %v1768_v60, %v2223_v36  ;;  %v1001_v18 = vmul.f32 %v1792_v9, %v2223_v36 }
  0xdf   : > { %2918 = vst [vmem:[#allocation28_spill] sm:$0xff] %v2227_v27  ;;  %v2263_v3 = vsel %vm2140_vm2, 0.0, %v589_v61  ;;  %v559_v45 = vadd.f32 %v1734_v34, %v535_v51  ;;  %v526_v16 = vmul.f32 %v1729_v32, %v484_v44  ;;  %v2929_v61 = vrot.slane %v2181_v26, 1 }
  0xe0   : > { %2919 = vst [vmem:[#allocation29_spill] sm:$0xff] %v2234_v35  ;;  %v2259_v35 = vsel %vm2240_vm3, 0.0, %v598_v30  ;;  %v700_v41 = vrot.slane %v2263_v3, 7  ;;  %v863_v44 = vmul.f32 %v1762_v56, %v2263_v3  ;;  %v960_v51 = vmul.f32 %v1789_v6, %v2263_v3 }
  0xe1   : > { %2922 = vst [vmem:[#allocation30_spill] sm:$0xff] %v2246_v23  ;;  %v695_v8 = vrot.slane %v2259_v35, 7  ;;  %v2271_v23 = vmul.f32 %v1789_v6, %v2259_v35  ;;  %v2276_v30 = vmul.f32 %v1795_v10, %v2259_v35  ;;  %v2286_v43 = vmul.f32 %v1795_v10, %v2263_v3 }
  0xe2   : > { %2923 = vst [vmem:[#allocation31_spill] sm:$0xff] %v2251_v5  ;;  %v920_v5 = vadd.f32 %v904_v59, %v887_v54  ;;  %v2290_v27 = vsel %vm707_vm8, %v690_v4, %v700_v41  ;;  %v2930_v31 = vrot.slane %v2263_v3, 1  ;;  %v550_v50 = vadd.f32 %v1734_v34, %v526_v16 }
  0xe3   : > { %2924 = vst [vmem:[#allocation32_spill] sm:$0xff] %v2263_v3  ;;  %v927_v59 = vmul.f32 %v1775_v63, %v2290_v27  ;;  %v509_v3 = vpop.f32.mrf.mxu2 }
  0xe4   : > { %2925 = vst [vmem:[#allocation33_spill] sm:$0xff] %v2271_v23  ;;  %v579_v23 = vmax.f32 %v559_v45, 0.0  ;;  %v788_v36 = vsel %vm774_vm11, %v2930_v31, %v2929_v61  ;;  %v570_v26 = vmax.f32 %v550_v50, 0.0 }
  0xe5   : > { %2926 = vst [vmem:[#allocation34_spill] sm:$0xff] %v2276_v30  ;;  %v721_v30 = vsel %vm707_vm8, %v700_v41, %v690_v4  ;;  %v2307_v54 = vsel %vm753_vm10, 0.0, %v788_v36  ;;  %v830_v4 = vmul.f32 %v1810_v17, %v2290_v27  ;;  %v943_v61 = vadd.f32 %v927_v59, %v910_v29 }
  0xe6   : > { %2927 = vst [vmem:[#allocation35_spill] sm:$0xff] %v2286_v43  ;;  %v2303_v45 = vsel %vm685_vm9, 0.0, %v721_v30  ;;  %v896_v31 = vmul.f32 %v1768_v60, %v2307_v54  ;;  %v1017_v30 = vadd.f32 %v1001_v18, %v984_v24  ;;  %v599_v43 = vmin.f32 %v579_v23, 6.0 }
  0xe7   : > { %2928 = vst [vmem:[#allocation36_spill] sm:$0xff] %v2290_v27  ;;  %v2315_v41 = vmul.f32 %v1810_v17, %v2303_v45  ;;  %v2321_v16 = vmul.f32 %v1775_v63, %v2303_v45  ;;  %v879_v36 = vadd.f32 %v863_v44, %v830_v4  ;;  %v2933_v27 = vunpack.c.l.b16 %v2088_v46 }
  0xe8   : > { %v2334_v29 = vsel %vm2240_vm3, 0.0, %v599_v43  ;;  %v590_v50 = vmin.f32 %v570_v26, 6.0  ;;  %v976_v46 = vadd.f32 %v960_v51, %v943_v61  ;;  %v2936_v51 = vrot.slane %v2259_v35, 1 }
  0xe9   : > { %2931 = vst [vmem:[#allocation37_spill] sm:$0xff] %v2315_v41  ;;  %v1209_v58 = vpack.c.b16 %v2933_v27, %v2933_v27  ;;  %v536_v41 = vmul.f32 %v1729_v32, %v509_v3  ;;  %v2328_v55 = vadd.f32 %v896_v31, %v879_v36  ;;  %v705_v27 = vrot.slane %v2334_v29, 7  ;;  %v486_v36 = vpop.f32.mrf.mxu0 }
  0xea   : > { %2932 = vst [vmem:[#allocation38_spill] sm:$0xff] %v2321_v16  ;;  %v993_v16 = vmul.f32 %v1792_v9, %v2307_v54  ;;  %v2874_v23 = vrot.slane %v2334_v29, 1  ;;  %v970_v24 = vmul.f32 %v1789_v6, %v2334_v29  ;;  %v1067_v25 = vmul.f32 %v1795_v10, %v2334_v29 }
  0xeb   : > { %v2350_v26 = vsel %vm2338_vm7, 0.0, %v590_v50  ;;  %v1238_v15 = vsel %vm1236_vm6, %v1209_v58, 0  ;;  %v560_v3 = vadd.f32 %v1734_v34, %v536_v41  ;;  %v716_v43 = vsel %vm707_vm8, %v695_v8, %v705_v27  ;;  %v1490_v58 = vld [vmem:[%s2848_s7] sm:$0xff] }
  0xec   : > { %v726_v44 = vsel %vm707_vm8, %v705_v27, %v695_v8  ;;  %v793_v4 = vsel %vm774_vm11, %v2874_v23, %v2936_v51  ;;  %1246 = vmatpush.bf16.msra.mxu1 %v1238_v15  ;;  %1492 = vmatpush.bf16.msra.mxu3 %v1238_v15  ;;  %v937_v8 = vmul.f32 %v1775_v63, %v716_v43  ;;  %v691_v15 = vrot.slane %v2350_v26, 7 }
  0xed   : > { %v748_v59 = vsel %vm685_vm9, 0.0, %v726_v44  ;;  %v2370_v41 = vsel %vm753_vm10, 0.0, %v793_v4  ;;  %v1034_v31 = vmul.f32 %v1908_v28, %v716_v43  ;;  %v2374_v61 = vadd.f32 %v993_v16, %v976_v46 }
  0xee   : > { %v2377_v50 = vmul.f32 %v1775_v63, %v748_v59  ;;  %v1003_v27 = vmul.f32 %v1792_v9, %v2370_v41  ;;  %v953_v44 = vadd.f32 %v937_v8, %v920_v5  ;;  %v2383_v51 = vmul.f32 %v1908_v28, %v748_v59 }
  0xef   : > { %2937 = vst [vmem:[#allocation39_spill] sm:$0xff] %v2374_v61  ;;  %v1050_v4 = vadd.f32 %v1034_v31, %v1017_v30  ;;  %v2388_v43 = vmul.f32 %v1762_v56, %v2350_v26  ;;  %v580_v16 = vmax.f32 %v560_v3, 0.0  ;;  %v611_v46 = vadd.s32 9, %v1742_v37 }
  0xf0   : > { %2938 = vst [vmem:[#allocation40_spill] sm:$0xff] %v2377_v50  ;;  %1247 = vmatpush.bf16.msra.mxu1 %v1490_v58  ;;  %v527_v50 = vmul.f32 %v1729_v32, %v486_v36  ;;  %1493 = vmatpush.bf16.msra.mxu3 %v1490_v58  ;;  %v986_v61 = vadd.f32 %v970_v24, %v953_v44  ;;  %v2939_v59 = vrot.slane %v2103_v39, 1  ;;  %v2940_v8 = vrot.slane %v1971_v20, 1 }
  0xf1   : > { %v2394_v5 = vmul.f32 %v1789_v6, %v2350_v26  ;;  %v2398_v30 = vmul.f32 %v1795_v10, %v2350_v26  ;;  %v600_v37 = vmin.f32 %v580_v16, 6.0  ;;  %vm621_vm12 = vcmp.eq.s32.totalorder %v611_v46, 0 }
  0xf2   : > { %v777_v3 = vsel %vm774_vm11, %v2940_v8, %v2939_v59  ;;  %vm631_vm13 = vcmp.eq.s32.totalorder %v611_v46, 17  ;;  %v551_v24 = vadd.f32 %v1734_v34, %v527_v50  ;;  %v2407_v58 = vadd.f32 %v1003_v27, %v986_v61  ;;  %v511_v50 = vpop.f32.mrf.mxu2 }
  0xf3   : > { %v2409_v31 = vadd.f32 %v1067_v25, %v1050_v4  ;;  %vm2411_vm14 = vmor %vm621_vm12, %vm631_vm13  ;;  %v876_v39 = vadd.f32 %v2054_v14, %v2171_v48  ;;  %v971_v20 = vadd.f32 %v1922_v42, %v2010_v11  ;;  %v1021_v61 = vmul.f32 %v1908_v28, %v2159_v53 }
  0xf4   : > { %v2421_v44 = vsel %vm2411_vm14, 0.0, %v600_v37  ;;  %v571_v16 = vmax.f32 %v551_v24, 0.0  ;;  %v1022_v25 = vmul.f32 %v1908_v28, %v2146_v7  ;;  %v893_v48 = vmul.f32 %v1768_v60, %v777_v3 }
  0xf5   : > { %v696_v27 = vrot.slane %v2421_v44, 7  ;;  %v763_v4 = vrot.slane %v2421_v44, 1  ;;  %v2431_v42 = vmul.f32 %v1792_v9, %v777_v3  ;;  %v2435_v11 = vmul.f32 %v1795_v10, %v2421_v44 }
  0xf6   : > { %v591_v14 = vmin.f32 %v571_v16, 6.0  ;;  %v1004_v53 = vadd.f32 %v1981_v49, %v971_v20  ;;  %v1038_v46 = vadd.f32 %v1022_v25, %v2027_v33  ;;  %v2439_v7 = vadd.f32 %v893_v48, %v876_v39 }
  0xf7   : > { %v2442_v59 = vperm.slane %v1773_v62, 2  ;;  %v537_v8 = vmul.f32 %v1729_v32, %v511_v50  ;;  %v2943_v37 = vrot.slane %v2134_v12, 1  ;;  %v2944_v24 = vrot.slane %v2099_v21, 1 }
  0xf8   : > { %v2453_v16 = vsel %vm2338_vm7, 0.0, %v591_v14  ;;  %v1037_v49 = vadd.f32 %v1021_v61, %v1004_v53  ;;  %v1071_v33 = vadd.f32 %v2130_v38, %v1038_v46  ;;  %v886_v62 = vadd.f32 %v2110_v47, %v2203_v22  ;;  %v2471_v47 = vld [vmem:[%s2846_s5] ss:$0 sm:$0xff] }
  0xf9   : > { %v782_v23 = vsel %vm774_vm11, %v2944_v24, %v2943_v37  ;;  %v701_v39 = vrot.slane %v2453_v16, 7  ;;  %v768_v32 = vrot.slane %v2453_v16, 1  ;;  %v865_v21 = vmul.f32 %v1762_v56, %v2453_v16 }
  0xfa   : > { %v1087_v12 = vmul.f32 %v2442_v59, %v777_v3  ;;  %v962_v18 = vmul.f32 %v1789_v6, %v2453_v16  ;;  %v1070_v20 = vadd.f32 %v2066_v19, %v1037_v49  ;;  %v1088_v38 = vmul.f32 %v2442_v59, %v2163_v57 }
  0xfb   : > { %v561_v22 = vadd.f32 %v1734_v34, %v537_v8  ;;  %v2476_v56 = vsel %vm707_vm8, %v691_v15, %v701_v39  ;;  %v722_v3 = vsel %vm707_vm8, %v701_v39, %v691_v15  ;;  %v903_v61 = vmul.f32 %v1768_v60, %v782_v23  ;;  %v2494_v15 = vld [vmem:[%s2847_s6] ss:$0 sm:$0xff] }
  0xfc   : > { %v948_v19 = vadd.f32 %v2034_v1, %v1917_v13  ;;  %v2485_v57 = vsel %vm685_vm9, 0.0, %v722_v3  ;;  %v832_v25 = vmul.f32 %v1810_v17, %v2476_v56  ;;  %v929_v34 = vmul.f32 %v1775_v63, %v2476_v56  ;;  %v2946_v3 = vld [vmem:[#allocation17_spill] sm:$0xff] }
  0xfd   : > { %v1103_v50 = vadd.f32 %v1087_v12, %v1070_v20  ;;  %v2498_v48 = vmul.f32 %v1810_v17, %v2485_v57  ;;  %v2502_v13 = vmul.f32 %v1795_v10, %v2453_v16  ;;  %v1104_v1 = vadd.f32 %v1088_v38, %v1071_v33  ;;  %v2945_v20 = vld [vmem:[#allocation24_spill] sm:$0xff] }
  0xfe   : > { %v581_v14 = vmax.f32 %v561_v22, 0.0  ;;  %v2504_v53 = vadd.f32 %v865_v21, %v832_v25  ;;  %v2508_v46 = vmul.f32 %v1775_v63, %v2485_v57  ;;  %v945_v8 = vadd.f32 %v929_v34, %v2328_v55 }
  0xff   : > { %v1123_v37 = vmul.f32 %v2471_v47, %v1103_v50  ;;  %v1124_v17 = vmul.f32 %v2471_v47, %v1104_v1  ;;  %v2513_v49 = vadd.f32 %v903_v61, %v886_v62  ;;  %v981_v39 = vadd.f32 %v1938_v2, %v948_v19 }
 0x100   : > { %v601_v24 = vmin.f32 %v581_v14, 6.0  ;;  %v2518_v21 = vmul.f32 %v1792_v9, %v782_v23  ;;  %v1031_v12 = vmul.f32 %v1908_v28, %v2192_v40  ;;  %v1032_v55 = vmul.f32 %v1908_v28, %v2945_v20  ;;  %v2947_v14 = vld [vmem:[#allocation19_spill] sm:$0xff] }
 0x101   : > { %v1143_v33 = vadd.f32 %v2494_v15, %v1123_v37  ;;  %v2524_v38 = vadd.f32 %v962_v18, %v945_v8  ;;  %v1144_v22 = vadd.f32 %v2494_v15, %v1124_v17  ;;  %v1014_v2 = vadd.f32 %v2946_v3, %v981_v39  ;;  %v2948_v17 = vld [vmem:[#allocation27_spill] sm:$0xff] }
 0x102   : > { %v681_v62 = vsel %vm2411_vm14, 0.0, %v601_v24  ;;  %v1097_v34 = vmul.f32 %v2442_v59, %v782_v23  ;;  %v1048_v37 = vadd.f32 %v1032_v55, %v2947_v14  ;;  %v1098_v23 = vmul.f32 %v2442_v59, %v2948_v17  ;;  %v2949_v55 = vld [vmem:[#allocation21_spill] sm:$0xff]  ;;  %v2953_v14 = vld [vmem:[#allocation23_spill] sm:$0xff] }
 0x103   : > { %v1159_v61 = vmax.f32 %v1143_v33, 0.0  ;;  %v706_v19 = vrot.slane %v681_v62, 7  ;;  %v773_v25 = vrot.slane %v681_v62, 1  ;;  %v1160_v50 = vmax.f32 %v1144_v22, 0.0 }
 0x104   : > { %v1069_v40 = vmul.f32 %v1795_v10, %v681_v62  ;;  %v1047_v1 = vadd.f32 %v1031_v12, %v1014_v2  ;;  %v2950_v62 = vld [vmem:[#allocation28_spill] sm:$0xff] }
 0x105   : > { %v1175_v18 = vmin.f32 %v1159_v61, 6.0  ;;  %v717_v36 = vsel %vm707_vm8, %v696_v27, %v706_v19  ;;  %v727_v8 = vsel %vm707_vm8, %v706_v19, %v696_v27  ;;  %v1176_v24 = vmin.f32 %v1160_v50, 6.0  ;;  %v2951_v19 = vld [vmem:[#allocation32_spill] sm:$0xff] }
 0x106   : > { %v750_v39 = vsel %vm685_vm9, 0.0, %v727_v8  ;;  %v794_v33 = vsel %vm774_vm11, %v773_v25, %v763_v4  ;;  %v1036_v12 = vmul.f32 %v1908_v28, %v717_v36  ;;  %v2554_v20 = vsel %vm774_vm11, %v763_v4, %v773_v25  ;;  %v2955_v4 = vld [vmem:[#allocation37_spill] sm:$0xff] }
 0x107   : > { %v2558_v27 = vsel %vm753_vm10, 0.0, %v794_v33  ;;  %v1080_v22 = vadd.f32 %v2949_v55, %v1047_v1  ;;  %v1081_v3 = vadd.f32 %v2950_v62, %v1048_v37  ;;  %v1191_v2 = vpack.c.bf16 %v1176_v24, %v1175_v18  ;;  %v2956_v25 = vld [vmem:[#allocation29_spill] sm:$0xff]  ;;  %v2957_v55 = vld [vmem:[#allocation15_spill] sm:$0xff]  ;;  %v2958_v37 = vld [vmem:[#allocation22_spill] sm:$0xff] }
 0x108   : > { %v1052_v61 = vadd.f32 %v1036_v12, %v2407_v58  ;;  %v2952_v50 = vrot.slane %v2951_v19, 1  ;;  %v2954_v36 = vrot.slane %v2953_v14, 1  ;;  %v878_v8 = vadd.f32 %v2956_v25, %v2955_v4  ;;  %v2959_v62 = vld [vmem:[#allocation36_spill] sm:$0xff] }
 0x109   : > { %v2572_v17 = vmul.f32 %v1908_v28, %v750_v39  ;;  %v1113_v33 = vadd.f32 %v1097_v34, %v1080_v22  ;;  %v1114_v1 = vadd.f32 %v1098_v23, %v1081_v3  ;;  %v940_v18 = vadd.f32 %v2958_v37, %v2957_v55  ;;  %1479 = vmatmul.msk.bf16.vlgmr.msra.gmra.mxu1 %vm1211_vm15, %v1191_v2  ;;  %v2960_v34 = vld [vmem:[#allocation18_spill] sm:$0xff]  ;;  %v2966_v37 = vld [vmem:[#allocation35_spill] sm:$0xff] }
 0x10a   : > { %v778_v44 = vsel %vm774_vm11, %v2954_v36, %v2952_v50  ;;  %v2577_v58 = vadd.f32 %v1069_v40, %v1052_v61  ;;  %v1024_v19 = vmul.f32 %v1908_v28, %v2959_v62  ;;  %v1023_v22 = vmul.f32 %v1908_v28, %v2303_v45  ;;  %v2961_v40 = vld [vmem:[#allocation26_spill] sm:$0xff]  ;;  %v2964_v45 = vld [vmem:[#allocation16_spill] sm:$0xff] }
 0x10b   : > { %v895_v24 = vmul.f32 %v1768_v60, %v778_v44  ;;  %v992_v12 = vmul.f32 %v1792_v9, %v778_v44  ;;  %v1133_v50 = vmul.f32 %v2471_v47, %v1113_v33  ;;  %v1134_v39 = vmul.f32 %v2471_v47, %v1114_v1 }
 0x10c   : > { %v973_v23 = vadd.f32 %v2960_v34, %v940_v18  ;;  %v1040_v2 = vadd.f32 %v1024_v19, %v2961_v40  ;;  %v1089_v61 = vmul.f32 %v2442_v59, %v778_v44  ;;  %v2962_v14 = vrot.slane %v2334_v29, 1 }
 0x10d   : > { %v2588_v3 = vadd.f32 %v895_v24, %v878_v8  ;;  %v2963_v36 = vrot.slane %v2259_v35, 1  ;;  %v1153_v25 = vadd.f32 %v2494_v15, %v1133_v50  ;;  %v1154_v33 = vadd.f32 %v2494_v15, %v1134_v39  ;;  %v2965_v8 = vld [vmem:[#allocation25_spill] sm:$0xff]  ;;  %v2967_v50 = vld [vmem:[#allocation20_spill] sm:$0xff] }
 0x10e   : > { %v1006_v1 = vadd.f32 %v2431_v42, %v973_v23  ;;  %v950_v55 = vadd.f32 %v2965_v8, %v2964_v45  ;;  %v1073_v18 = vadd.f32 %v2966_v37, %v1040_v2  ;;  %v1090_v44 = vmul.f32 %v2442_v59, %v2307_v54  ;;  %v2971_v37 = vld [vmem:[#allocation38_spill] sm:$0xff] }
 0x10f   : > { %v783_v4 = vsel %vm774_vm11, %v2963_v36, %v2962_v14  ;;  %v1100_v35 = vmul.f32 %v2442_v59, %v2370_v41  ;;  %v1169_v24 = vmax.f32 %v1153_v25, 0.0  ;;  %v1170_v62 = vmax.f32 %v1154_v33, 0.0  ;;  %v2970_v14 = vld [vmem:[#allocation31_spill] sm:$0xff] }
 0x110   : > { %v1099_v29 = vmul.f32 %v2442_v59, %v783_v4  ;;  %v1039_v19 = vadd.f32 %v1023_v22, %v1006_v1  ;;  %v983_v39 = vadd.f32 %v2967_v50, %v950_v55  ;;  %v1106_v34 = vadd.f32 %v1090_v44, %v1073_v18 }
 0x111   : > { %v1116_v42 = vadd.f32 %v1100_v35, %v2409_v31  ;;  %v2968_v23 = vrot.slane %v2350_v26, 1  ;;  %v1185_v22 = vmin.f32 %v1169_v24, 6.0  ;;  %v1186_v2 = vmin.f32 %v1170_v62, 6.0  ;;  %v2973_v24 = vld [vmem:[#allocation30_spill] sm:$0xff] }
 0x112   : > { %v1072_v36 = vadd.f32 %v2970_v14, %v1039_v19  ;;  %v1016_v31 = vadd.f32 %v2518_v21, %v983_v39  ;;  %v1126_v25 = vmul.f32 %v2471_v47, %v1106_v34  ;;  %v880_v26 = vadd.f32 %v2388_v43, %v2498_v48  ;;  %v2972_v48 = vld [vmem:[#allocation34_spill] sm:$0xff] }
 0x113   : > { %v779_v54 = vsel %vm774_vm11, %v2968_v23, %v768_v32  ;;  %v2969_v40 = vmov %v2968_v23  ;;  %v1136_v33 = vmul.f32 %v2471_v47, %v1116_v42  ;;  %v1196_v16 = vpack.c.bf16 %v1186_v2, %v1185_v22 }
 0x114   : > { %v789_v41 = vsel %vm774_vm11, %v768_v32, %v2969_v40  ;;  %v1105_v45 = vadd.f32 %v1089_v61, %v1072_v36  ;;  %v1049_v52 = vadd.f32 %v2383_v51, %v1016_v31  ;;  %v897_v32 = vmul.f32 %v1768_v60, %v779_v54 }
 0x115   : > { %v808_v1 = vsel %vm753_vm10, 0.0, %v789_v41  ;;  %v1146_v8 = vadd.f32 %v2494_v15, %v1126_v25  ;;  %v1156_v21 = vadd.f32 %v2494_v15, %v1136_v33  ;;  %v942_v18 = vadd.f32 %v2971_v37, %v2439_v7  ;;  %1484 = vmatmul.msk.bf16.vlgmr.msra.gmra.mxu3 %vm1211_vm15, %v1196_v16  ;;  %v2976_v16 = vld [vmem:[#allocation33_spill] sm:$0xff]  ;;  %v2977_v37 = vld [vmem:[#allocation4_spill] sm:$0xff] }
 0x116   : > { %v898_v55 = vmul.f32 %v1768_v60, %v808_v1  ;;  %v1125_v0 = vmul.f32 %v2471_v47, %v1105_v45  ;;  %v1002_v43 = vmul.f32 %v1792_v9, %v783_v4  ;;  %v1082_v61 = vadd.f32 %v2972_v48, %v1049_v52 }
 0x117   : > { %v913_v51 = vadd.f32 %v897_v32, %v880_v26  ;;  %v1162_v44 = vmax.f32 %v1146_v8, 0.0  ;;  %v1172_v35 = vmax.f32 %v1156_v21, 0.0  ;;  %v975_v62 = vadd.f32 %v2973_v24, %v942_v18  ;;  %v2978_v18 = vld [vmem:[#allocation3_spill] sm:$0xff] }
 0x118   : > { %v994_v19 = vmul.f32 %v1792_v9, %v779_v54  ;;  %v1145_v60 = vadd.f32 %v2494_v15, %v1125_v0  ;;  %v1115_v50 = vadd.f32 %v1099_v29, %v1082_v61  ;;  %v914_v7 = vadd.f32 %v898_v55, %v2504_v53  ;;  %v2974_v29 = vld [vmem:[#allocation39_spill] sm:$0xff] }
 0x119   : > { %v1025_v39 = vmul.f32 %v1908_v28, %v2485_v57  ;;  %v1178_v34 = vmin.f32 %v1162_v44, 6.0  ;;  %v995_v4 = vmul.f32 %v1792_v9, %v808_v1  ;;  %v1008_v42 = vadd.f32 %v992_v12, %v975_v62  ;;  %v2975_v57 = vld [vmem:[#allocation40_spill] sm:$0xff] }
 0x11a   : > { %v1026_v23 = vmul.f32 %v1908_v28, %v2476_v56  ;;  %v1161_v40 = vmax.f32 %v1145_v60, 0.0  ;;  %v1135_v41 = vmul.f32 %v2471_v47, %v1115_v50  ;;  %v1188_v22 = vmin.f32 %v1172_v35, 6.0  ;;  %v2979_v50 = vld [vmem:[#allocation2_spill] sm:$0xff] }
 0x11b   : > { %v1091_v2 = vmul.f32 %v2442_v59, %v779_v54  ;;  %v1041_v14 = vadd.f32 %v1025_v39, %v1008_v42  ;;  %v1092_v53 = vmul.f32 %v2442_v59, %v808_v1  ;;  %v952_v31 = vadd.f32 %v2975_v57, %v2513_v49 }
 0x11c   : > { %v1042_v36 = vadd.f32 %v1026_v23, %v2974_v29  ;;  %v1177_v25 = vmin.f32 %v1161_v40, 6.0  ;;  %v1155_v12 = vadd.f32 %v2494_v15, %v1135_v41  ;;  %v1102_v56 = vmul.f32 %v2442_v59, %v2558_v27 }
 0x11d   : > { %v944_v33 = vadd.f32 %v2508_v46, %v2588_v3  ;;  %v1074_v26 = vadd.f32 %v2398_v30, %v1041_v14  ;;  %v985_v45 = vadd.f32 %v2976_v16, %v952_v31  ;;  %v1011_v1 = vadd.f32 %v995_v4, %v2524_v38  ;;  %v2982_v14 = vld [vmem:[#allocation5_spill] sm:$0xff]  ;;  %v2985_v16 = vld [vmem:[#allocation11_spill] sm:$0xff] }
 0x11e   : > { %v1075_v54 = vadd.f32 %v2502_v13, %v1042_v36  ;;  %v1192_v52 = vpack.c.bf16 %v1178_v34, %v1177_v25  ;;  %v1171_v32 = vmax.f32 %v1155_v12, 0.0  ;;  %v1118_v49 = vadd.f32 %v1102_v56, %v2577_v58 }
 0x11f   : > { %v977_v8 = vadd.f32 %v2394_v5, %v944_v33  ;;  %v1107_v21 = vadd.f32 %v1091_v2, %v1074_v26  ;;  %v1018_v27 = vadd.f32 %v1002_v43, %v985_v45  ;;  %v1027_v46 = vmul.f32 %v1908_v28, %v2977_v37  ;;  %v2984_v26 = vld [vmem:[#allocation12_spill] sm:$0xff] }
 0x120   : > { %v1108_v55 = vadd.f32 %v1092_v53, %v1075_v54  ;;  %1480 = vmatmul.msk.bf16.gmra.mxu1 %vm1211_vm15, %v1192_v52  ;;  %v1187_v30 = vmin.f32 %v1171_v32, 6.0  ;;  %v1138_v13 = vmul.f32 %v2471_v47, %v1118_v49  ;;  %v1028_v38 = vmul.f32 %v1908_v28, %v2978_v18  ;;  %v2986_v49 = vld [vmem:[#allocation13_spill] sm:$0xff] }
 0x121   : > { %v1010_v3 = vadd.f32 %v994_v19, %v977_v8  ;;  %v1127_v0 = vmul.f32 %v2471_v47, %v1107_v21  ;;  %v1051_v5 = vadd.f32 %v2572_v17, %v1018_v27  ;;  %v1101_v43 = vmul.f32 %v2442_v59, %v2554_v20  ;;  %v2987_v21 = vld [vmem:[#allocation9_spill] sm:$0xff] }
 0x122   : > { %v1128_v58 = vmul.f32 %v2471_v47, %v1108_v55  ;;  %v930_v48 = vmul.f32 %v1775_v63, %v2977_v37  ;;  %v1197_v61 = vpack.c.bf16 %v1188_v22, %v1187_v30  ;;  %v1044_v35 = vadd.f32 %v1028_v38, %v1011_v1  ;;  %v2981_v22 = vld [vmem:[#allocation8_spill] sm:$0xff]  ;;  %v2988_v37 = vld [vmem:[#allocation14_spill] sm:$0xff] }
 0x123   : > { %v1043_v44 = vadd.f32 %v1027_v46, %v1010_v3  ;;  %v931_v24 = vmul.f32 %v1775_v63, %v2978_v18  ;;  %v1147_v62 = vadd.f32 %v2494_v15, %v1127_v0  ;;  %v1084_v60 = vadd.f32 %v2435_v11, %v1051_v5  ;;  %v2980_v63 = vld [vmem:[#allocation6_spill] sm:$0xff] }
 0x124   : > { %v1148_v19 = vadd.f32 %v2494_v15, %v1128_v58  ;;  %v964_v17 = vmul.f32 %v1789_v6, %v2979_v50  ;;  %v1061_v20 = vmul.f32 %v1795_v10, %v2979_v50  ;;  %v1158_v39 = vadd.f32 %v2494_v15, %v1138_v13  ;;  %v2989_v30 = vld [vmem:[#allocation10_spill] sm:$0xff] }
 0x125   : > { %v946_v34 = vadd.f32 %v930_v48, %v913_v51  ;;  %v1163_v4 = vmax.f32 %v1147_v62, 0.0  ;;  %v1117_v23 = vadd.f32 %v1101_v43, %v1084_v60  ;;  %v947_v40 = vadd.f32 %v931_v24, %v914_v7  ;;  %1485 = vmatmul.msk.bf16.gmra.mxu3 %vm1211_vm15, %v1197_v61  ;;  %v2983_v51 = vld [vmem:[#allocation7_spill] sm:$0xff] }
 0x126   : > { %v1164_v42 = vmax.f32 %v1148_v19, 0.0  ;;  %v996_v41 = vmul.f32 %v1792_v9, %v2980_v63  ;;  %v1076_v11 = vadd.f32 %v2981_v22, %v1043_v44  ;;  %v1077_v2 = vadd.f32 %v1061_v20, %v1044_v35 }
 0x127   : > { %v979_v6 = vadd.f32 %v2982_v14, %v946_v34  ;;  %v1137_v29 = vmul.f32 %v2471_v47, %v1117_v23  ;;  %v1093_v36 = vmul.f32 %v2442_v59, %v2980_v63  ;;  %v1094_v53 = vmul.f32 %v2442_v59, %v2983_v51 }
 0x128   : > { %v980_v57 = vadd.f32 %v964_v17, %v947_v40  ;;  %v1179_v7 = vmin.f32 %v1163_v4, 6.0  ;;  %v1180_v31 = vmin.f32 %v1164_v42, 6.0  ;;  %v997_v25 = vmul.f32 %v1792_v9, %v2983_v51  ;;  %v2739_v40 = vld [vmem:[%s2850_s9] ss:$0 sm:$0xff] }
 0x129   : > { %v1012_v12 = vadd.f32 %v996_v41, %v979_v6  ;;  %v1157_v56 = vadd.f32 %v2494_v15, %v1137_v29  ;;  %v1174_v33 = vmax.f32 %v1158_v39, 0.0  ;;  %v1029_v54 = vmul.f32 %v1908_v28, %v2984_v26 }
 0x12a   : > { %v1030_v45 = vmul.f32 %v1908_v28, %v2985_v16  ;;  %v1109_v1 = vadd.f32 %v1093_v36, %v1076_v11  ;;  %v1110_v52 = vadd.f32 %v1094_v53, %v1077_v2  ;;  %v1013_v32 = vadd.f32 %v997_v25, %v980_v57  ;;  %v1541_v11 = vld [vmem:[%s1694_s27 + $0x10] sm:$0xff]  ;;  %v1542_v36 = vld [vmem:[%s1694_s27 + $0x18] sm:$0xff]  ;;  %v1543_v25 = vld [vmem:[%s1694_s27 + $0x60] sm:$0xff] }
 0x12b   : > { %v1095_v8 = vmul.f32 %v2442_v59, %v2986_v49  ;;  %v1062_v55 = vmul.f32 %v1795_v10, %v2987_v21  ;;  %v1173_v9 = vmax.f32 %v1157_v56, 0.0  ;;  %v1045_v27 = vadd.f32 %v1029_v54, %v1012_v12  ;;  %v1544_v54 = vld [vmem:[%s1694_s27 + $0x20] sm:$0xff] }
 0x12c   : > { %v1096_v46 = vmul.f32 %v2442_v59, %v2988_v37  ;;  %v1063_v13 = vmul.f32 %v1795_v10, %v2989_v30  ;;  %v1193_v3 = vpack.c.bf16 %v1180_v31, %v1179_v7  ;;  %v1046_v18 = vadd.f32 %v1030_v45, %v1013_v32  ;;  %v1545_v32 = vld [vmem:[%s1694_s27 + $0x68] sm:$0xff] }
 0x12d   : > { %v1190_v28 = vmin.f32 %v1174_v33, 6.0  ;;  %v1078_v38 = vadd.f32 %v1062_v55, %v1045_v27  ;;  %v1189_v0 = vmin.f32 %v1173_v9, 6.0  ;;  %v1129_v58 = vmul.f32 %v2471_v47, %v1109_v1  ;;  %v1546_v9 = vld [vmem:[%s1694_s27 + $0x28] sm:$0xff] }
 0x12e   : > { %v1130_v5 = vmul.f32 %v2471_v47, %v1110_v52  ;;  %v1079_v43 = vadd.f32 %v1063_v13, %v1046_v18  ;;  %v1547_v13 = vld [vmem:[%s1694_s27 + $0x70] sm:$0xff] }
 0x12f   : > { %v1111_v48 = vadd.f32 %v1095_v8, %v1078_v38  ;;  %v1198_v59 = vpack.c.bf16 %v1190_v28, %v1189_v0  ;;  %v1149_v35 = vadd.f32 %v2494_v15, %v1129_v58  ;;  %v1548_v0 = vld [vmem:[%s1694_s27 + $0x30] sm:$0xff] }
 0x130   : > { %1481 = vmatmul.msk.bf16.gmra.mxu1 %vm1211_vm15, %v1193_v3  ;;  %v1112_v61 = vadd.f32 %v1096_v46, %v1079_v43  ;;  %v1150_v10 = vadd.f32 %v2494_v15, %v1130_v5 }
 0x131   : > { %v1131_v44 = vmul.f32 %v2471_v47, %v1111_v48  ;;  %v1165_v50 = vmax.f32 %v1149_v35, 0.0 }
 0x132   : > { %v1132_v24 = vmul.f32 %v2471_v47, %v1112_v61  ;;  %v1166_v17 = vmax.f32 %v1150_v10, 0.0  ;;  %v1549_v61 = vld [vmem:[%s1694_s27 + $0x78] sm:$0xff] }
 0x133   : > { %v1151_v62 = vadd.f32 %v2494_v15, %v1131_v44  ;;  %v1181_v4 = vmin.f32 %v1165_v50, 6.0 }
 0x134   : > { %v1152_v19 = vadd.f32 %v2494_v15, %v1132_v24  ;;  %v1182_v42 = vmin.f32 %v1166_v17, 6.0  ;;  %v2734_v15 = vld [vmem:[%s2849_s8] ss:$0 sm:$0xff]  ;;  %v1550_v24 = vld [vmem:[%s1694_s27 + $0x38] sm:$0xff] }
 0x135   : > { %v1167_v60 = vmax.f32 %v1151_v62, 0.0  ;;  %1486 = vmatmul.msk.bf16.gmra.mxu3 %vm1211_vm15, %v1198_v59  ;;  %v1551_v17 = vld [vmem:[%s1694_s27 + $0x80] sm:$0xff] }
 0x136   : > { %v1168_v20 = vmax.f32 %v1152_v19, 0.0  ;;  %v1194_v47 = vpack.c.bf16 %v1182_v42, %v1181_v4  ;;  %v1552_v42 = vld [vmem:[%s1694_s27 + $0x40] sm:$0xff] }
 0x137   : > { %v1183_v39 = vmin.f32 %v1167_v60, 6.0 }
 0x138   : > { %v1184_v34 = vmin.f32 %v1168_v20, 6.0 }
 0x13a   : > { %v1195_v23 = vpack.c.bf16 %v1184_v34, %v1183_v39 }
 0x140   : > { %1482 = vmatmul.msk.bf16.gmra.mxu1 %vm1211_vm15, %v1194_v47 }
 0x150   : > { %1483 = vmatmul.msk.bf16.gmra.mxu1 %vm1211_vm15, %v1195_v23 }
 0x186   : > { %v1249_v63 = vpop.f32.mrf.mxu1 }
 0x187   : > { %v1293_v41 = vmul.f32 %v2734_v15, %v1249_v63 }
 0x189   : > { %v1313_v22 = vadd.f32 %v2739_v40, %v1293_v41 }
 0x18b   : > { %v1329_v2 = vadd.f32 %v1541_v11, %v1313_v22  ;;  %v1553_v22 = vld [vmem:[%s1694_s27 + $0x88] sm:$0xff] }
 0x18d   : > { %1345 = vst.msk [vmem:[%s2746_s30] sm:$0xff] %vm420_vm1, %v1329_v2 }
 0x18e   : > { %v1251_v14 = vpop.f32.mrf.mxu1 }
 0x18f   : > { %v1294_v6 = vmul.f32 %v2734_v15, %v1251_v14 }
 0x191   : > { %v1314_v29 = vadd.f32 %v2739_v40, %v1294_v6  ;;  %v1554_v6 = vld [vmem:[%s1694_s27 + $0x48] sm:$0xff] }
 0x193   : > { %v1330_v51 = vadd.f32 %v1542_v36, %v1314_v29 }
 0x195   : > { %1346 = vst.msk [vmem:[%s2746_s30 + $0x8] sm:$0xff] %vm420_vm1, %v1330_v51 }
 0x198   : > { %v1274_v53 = vpop.f32.mrf.mxu3 }
 0x199   : > { %v1303_v57 = vmul.f32 %v2734_v15, %v1274_v53 }
 0x19b   : > { %v1323_v7 = vadd.f32 %v2739_v40, %v1303_v57  ;;  %v1555_v57 = vld [vmem:[%s1694_s27 + $0x50] sm:$0xff] }
 0x19d   : > { %v1254_v31 = vpop.f32.mrf.mxu1  ;;  %v1339_v12 = vadd.f32 %v1543_v25, %v1323_v7 }
 0x19e   : > { %v1295_v56 = vmul.f32 %v2734_v15, %v1254_v31 }
 0x19f   : > { %1355 = vst.msk [vmem:[%s2746_s30 + $0x50] sm:$0xff] %vm420_vm1, %v1339_v12 }
 0x1a0   : > { %v1315_v33 = vadd.f32 %v2739_v40, %v1295_v56  ;;  %v1276_v26 = vpop.f32.mrf.mxu3  ;;  %v1556_v56 = vld [vmem:[%s1694_s27 + $0x58] sm:$0xff] }
 0x1a1   : > { %v1304_v45 = vmul.f32 %v2734_v15, %v1276_v26 }
 0x1a2   : > { %v1331_v16 = vadd.f32 %v1544_v54, %v1315_v33 }
 0x1a3   : > { %v1324_v1 = vadd.f32 %v2739_v40, %v1304_v45 }
 0x1a4   : > { %1347 = vst.msk [vmem:[%s2746_s30 + $0x10] sm:$0xff] %vm420_vm1, %v1331_v16 }
 0x1a5   : > { %v1256_v52 = vpop.f32.mrf.mxu1  ;;  %v1340_v49 = vadd.f32 %v1545_v32, %v1324_v1 }
 0x1a6   : > { %v1296_v8 = vmul.f32 %v2734_v15, %v1256_v52 }
 0x1a7   : > { %1356 = vst.msk [vmem:[%s2746_s30 + $0x58] sm:$0xff] %vm420_vm1, %v1340_v49 }
 0x1a8   : > { %v1316_v21 = vadd.f32 %v2739_v40, %v1296_v8  ;;  %v1279_v55 = vpop.f32.mrf.mxu3 }
 0x1a9   : > { %v1305_v37 = vmul.f32 %v2734_v15, %v1279_v55 }
 0x1aa   : > { %v1332_v27 = vadd.f32 %v1546_v9, %v1316_v21 }
 0x1ab   : > { %v1325_v46 = vadd.f32 %v2739_v40, %v1305_v37 }
 0x1ac   : > { %1348 = vst.msk [vmem:[%s2746_s30 + $0x18] sm:$0xff] %vm420_vm1, %v1332_v27 }
 0x1ad   : > { %v1259_v30 = vpop.f32.mrf.mxu1  ;;  %v1341_v3 = vadd.f32 %v1547_v13, %v1325_v46 }
 0x1ae   : > { %v1297_v18 = vmul.f32 %v2734_v15, %v1259_v30 }
 0x1af   : > { %1357 = vst.msk [vmem:[%s2746_s30 + $0x60] sm:$0xff] %vm420_vm1, %v1341_v3 }
 0x1b0   : > { %v1317_v28 = vadd.f32 %v2739_v40, %v1297_v18  ;;  %v1281_v38 = vpop.f32.mrf.mxu3 }
 0x1b1   : > { %v1306_v5 = vmul.f32 %v2734_v15, %v1281_v38 }
 0x1b2   : > { %v1333_v58 = vadd.f32 %v1548_v0, %v1317_v28 }
 0x1b3   : > { %v1326_v43 = vadd.f32 %v2739_v40, %v1306_v5 }
 0x1b4   : > { %1349 = vst.msk [vmem:[%s2746_s30 + $0x20] sm:$0xff] %vm420_vm1, %v1333_v58 }
 0x1b5   : > { %v1261_v48 = vpop.f32.mrf.mxu1  ;;  %v1342_v44 = vadd.f32 %v1549_v61, %v1326_v43 }
 0x1b6   : > { %v1298_v59 = vmul.f32 %v2734_v15, %v1261_v48 }
 0x1b7   : > { %1358 = vst.msk [vmem:[%s2746_s30 + $0x68] sm:$0xff] %vm420_vm1, %v1342_v44 }
 0x1b8   : > { %v1318_v35 = vadd.f32 %v2739_v40, %v1298_v59  ;;  %v1284_v10 = vpop.f32.mrf.mxu3 }
 0x1b9   : > { %v1307_v19 = vmul.f32 %v2734_v15, %v1284_v10 }
 0x1ba   : > { %v1334_v62 = vadd.f32 %v1550_v24, %v1318_v35 }
 0x1bb   : > { %v1327_v60 = vadd.f32 %v2739_v40, %v1307_v19 }
 0x1bc   : > { %1350 = vst.msk [vmem:[%s2746_s30 + $0x28] sm:$0xff] %vm420_vm1, %v1334_v62 }
 0x1bd   : > { %v1264_v50 = vpop.f32.mrf.mxu1  ;;  %v1343_v20 = vadd.f32 %v1551_v17, %v1327_v60 }
 0x1be   : > { %v1299_v39 = vmul.f32 %v2734_v15, %v1264_v50 }
 0x1bf   : > { %1359 = vst.msk [vmem:[%s2746_s30 + $0x70] sm:$0xff] %vm420_vm1, %v1343_v20 }
 0x1c0   : > { %v1319_v34 = vadd.f32 %v2739_v40, %v1299_v39  ;;  %v1286_v4 = vpop.f32.mrf.mxu3 }
 0x1c1   : > { %v1308_v47 = vmul.f32 %v2734_v15, %v1286_v4 }
 0x1c2   : > { %v1335_v23 = vadd.f32 %v1552_v42, %v1319_v34 }
 0x1c3   : > { %v1328_v63 = vadd.f32 %v2739_v40, %v1308_v47 }
 0x1c4   : > { %1351 = vst.msk [vmem:[%s2746_s30 + $0x30] sm:$0xff] %vm420_vm1, %v1335_v23 }
 0x1c5   : > { %v1266_v41 = vpop.f32.mrf.mxu1  ;;  %v1344_v11 = vadd.f32 %v1553_v22, %v1328_v63 }
 0x1c6   : > { %v1300_v2 = vmul.f32 %v2734_v15, %v1266_v41 }
 0x1c7   : > { %1360 = vst.msk [vmem:[%s2746_s30 + $0x78] sm:$0xff] %vm420_vm1, %v1344_v11 }
 0x1c8   : > { %v1320_v14 = vadd.f32 %v2739_v40, %v1300_v2 }
 0x1ca   : > { %v1336_v29 = vadd.f32 %v1554_v6, %v1320_v14 }
 0x1cc   : > { %1352 = vst.msk [vmem:[%s2746_s30 + $0x38] sm:$0xff] %vm420_vm1, %v1336_v29 }
 0x1cd   : > { %v1269_v36 = vpop.f32.mrf.mxu1 }
 0x1ce   : > { %v1301_v51 = vmul.f32 %v2734_v15, %v1269_v36 }
 0x1d0   : > { %v1321_v53 = vadd.f32 %v2739_v40, %v1301_v51 }
 0x1d2   : > { %v1337_v7 = vadd.f32 %v1555_v57, %v1321_v53 }
 0x1d4   : > { %1353 = vst.msk [vmem:[%s2746_s30 + $0x40] sm:$0xff] %vm420_vm1, %v1337_v7 }
 0x1d5   : > { %v1271_v31 = vpop.f32.mrf.mxu1 }
 0x1d6   : > { %v1302_v25 = vmul.f32 %v2734_v15, %v1271_v31 }
 0x1d8   : > { %v1322_v12 = vadd.f32 %v2739_v40, %v1302_v25 }
 0x1da   : > { %v1338_v33 = vadd.f32 %v1556_v56, %v1322_v12 }
 0x1dc   : > { %1354 = vst.msk [vmem:[%s2746_s30 + $0x48] sm:$0xff] %vm420_vm1, %v1338_v33 }
 0x1dd PF: > { %s20_s17 = sadd.s32 1, %s1595_s17   ;;  %s2990_s13 = smov %s1587_s15 }
 0x1de   : > { %p17_p7 = scmp.ge.s32.totalorder %s20_s17, 6   ;;  %s2991_s14 = smov %s1591_s16 }
 0x1df   : > { %s2992_s15 = smov %s2995_s18  ;;  %s2993_s16 = smov %s2999_s19 }
 0x1e0   :  { %19 = sbr.rel (!%p17_p7) target bundleno = 3 (0x3), region = 91 }

</bundles_post_ra>
